<compile_context>
chip_gen: v7x
topology: tpu7x:2x2x1
jax: 0.10.0
libtpu: 0.0.40
codegen_flags: <defaults>
</compile_context>

<pallas_src>
import functools

import numpy as np
import jax
import jax.numpy as jnp
from jax.experimental import pallas as pl
from jax.experimental.pallas import tpu as pltpu


LANE = 128       # TPU lane width; all feature dims are zero-padded to this
_LN_EPS = 1e-5


def _round_up(x, m):
    return (x + m - 1) // m * m


# ----------------------------------------------------------------------------
# In-kernel helpers
# ----------------------------------------------------------------------------
def _layer_norm(h, gamma, beta, d_true):
    """Masked two-pass LayerNorm over the last axis (zero-padded to 128 lanes).

    Padded lanes of `h` are exactly 0, so the lane-sum over all 128 lanes equals
    the sum over the true `d_true` lanes; centering is masked so padded lanes do
    not contribute mean^2 terms to the variance.  gamma/beta are zero-padded, so
    padded output lanes stay exactly 0.
    """
    inv_d = 1.0 / float(d_true)
    mean = jnp.sum(h, axis=-1, keepdims=True) * inv_d
    lane = jax.lax.broadcasted_iota(jnp.int32, h.shape, h.ndim - 1)
    centered = jnp.where(lane < d_true, h - mean, 0.0)
    var = jnp.sum(centered * centered, axis=-1, keepdims=True) * inv_d
    return centered * jax.lax.rsqrt(var + _LN_EPS) * gamma + beta


def _fused_rgcn_kernel(*refs, n_gnn, n_dense, num_rel, m_group,
                       gnn_true_dim, dense_cfg, cast):
    """Entire RGCN forward for ONE graph group.

    refs = [x, a_bd,
            (w_aug, b, gamma, beta) x n_gnn,
            (w,     b, gamma, beta) x n_dense,
            emb_out, logits_out]

      x      : [Mg, 128]            zero-padded node features for this group (f32)
      a_bd   : [R*Mg, Mg]           block-diagonal normalized relational adjacency
                                    for this group, already in the MXU dtype
      w_aug  : [(R+1)*128, 128]     [W_root; W_rel_0; ...; W_rel_{R-1}] (MXU dtype)
    """
    x_ref, a_ref = refs[0], refs[1]
    p = 2
    gnn_refs = [refs[p + 4 * i: p + 4 * i + 4] for i in range(n_gnn)]
    p += 4 * n_gnn
    dense_refs = [refs[p + 4 * i: p + 4 * i + 4] for i in range(n_dense)]
    p += 4 * n_dense
    emb_ref, logits_ref = refs[p], refs[p + 1]

    a = a_ref[...]                       # already host-cast to the MXU dtype
    mxu = a.dtype
    h = x_ref[...]                       # activations stay f32 (VPU / LayerNorm path)

    # ---- GNN stack: RGCNConv(mean aggr) -> ReLU -> LayerNorm, fused per layer ----
    # TODO(synk): for huge per-group adjacencies (beyond v7x's 64 MiB VMEM) stream
    # a_bd via memory_space=pl.ANY + pltpu.emit_pipeline over destination-row slabs.
    for w_ref, b_ref, g_ref, be_ref in gnn_refs:
        h_mx = h.astype(mxu) if cast else h
        # One batched matmul for all relations: [R*Mg, Mg] @ [Mg, F] -> [R*Mg, F]
        msgs = jnp.dot(a, h_mx, preferred_element_type=jnp.float32)
        msgs_mx = msgs.astype(mxu) if cast else msgs
        # Lane-concat self features + per-relation messages directly in MXU dtype.
        pieces = [h_mx] + [msgs_mx[r * m_group:(r + 1) * m_group, :]
                           for r in range(num_rel)]
        x_aug = jnp.concatenate(pieces, axis=-1)            # [Mg, (R+1)*128]
        # Single large-K matmul against the stacked [W_root; W_rel_r] weights.
        out = jnp.dot(x_aug, w_ref[...],
                      preferred_element_type=jnp.float32) + b_ref[...]
        h = jnp.maximum(out, 0.0)                            # ReLU (f32)
        h = _layer_norm(h, g_ref[...], be_ref[...], gnn_true_dim)
    emb_ref[...] = h                                         # lane-dense store

    # ---- dense head: Linear [+ ReLU + LayerNorm (+ Dropout: inference identity)] ----
    z = h
    for (w_ref, b_ref, g_ref, be_ref), (d_true, do_relu, do_ln) in zip(dense_refs,
                                                                       dense_cfg):
        z_mx = z.astype(mxu) if cast else z
        z = jnp.dot(z_mx, w_ref[...],
                    preferred_element_type=jnp.float32) + b_ref[...]
        if do_relu:
            z = jnp.maximum(z, 0.0)
        if do_ln:
            z = _layer_norm(z, g_ref[...], be_ref[...], d_true)
    logits_ref[...] = z                                      # lane-dense store
    # preds = ReLU(logits) is computed outside the kernel (pure elementwise of an
    # output already written back; saves one Mg*128*4-byte HBM writeback).


# ----------------------------------------------------------------------------
# Host-side packing + wrapper
# ----------------------------------------------------------------------------
def _pad2(a, rows, cols, dtype=jnp.float32):
    a = jnp.asarray(a, jnp.float32)
    a = jnp.pad(a, ((0, rows - a.shape[0]), (0, cols - a.shape[1])))
    return a.astype(dtype)


def rgcn_forward(x, adj, params, nodes_per_graph, *,
                 mxu_dtype=jnp.bfloat16, check_block_diagonal=True):
    """Reproduces RGCN.forward (n_posterior_samples=None, no target scaling).

    x   : [N, F_in] node features (graphs contiguous, `nodes_per_graph` nodes each)
    adj : [R, N, N] dense normalized adjacency, A[r, i, j] = 1/deg_r(i) (j->i);
          must be block-diagonal per graph (asserted host-side).
    mxu_dtype: dtype of the MXU operands (adjacency, weights).  Default bf16 —
          v6e/v7x MXUs are bf16-native; accumulation / LayerNorm stay f32.
          Pass jnp.float32 to match the PyTorch reference bit-for-bit-ish.
    """
    n, f_in = x.shape
    num_rel = adj.shape[0]
    hidden = params["gnn"][0]["w_root"].shape[1]
    out_dim = params["dense"][-1]["w"].shape[1]
    assert f_in <= LANE and hidden <= LANE and out_dim <= LANE, \
        "feature dims are padded to a single 128-lane group"
    p_g = int(nodes_per_graph)
    assert n % p_g == 0, "graphs must be contiguous with nodes_per_graph nodes each"
    n_graphs = n // p_g

    mxu_dtype = jnp.dtype(mxu_dtype)
    cast = (mxu_dtype != jnp.float32)
    itemsize = mxu_dtype.itemsize
    row_align = 8 if itemsize >= 4 else (16 if itemsize == 2 else 32)

    # ---- graph-group planning: batch graphs until the matmul M dim is ~128 ----
    gpg = min(n_graphs, max(1, LANE // p_g))          # graphs per grid step
    m_group = _round_up(gpg * p_g, row_align)
    n_groups = -(-n_graphs // gpg)

    # ---- host-side packing (concrete inputs; block-diagonal per group) ----
    x_f = np.asarray(x, np.float32)
    adj_f = np.asarray(adj, np.float32)
    if check_block_diagonal:
        blk_sum = sum(
            np.abs(adj_f[:, g * p_g:(g + 1) * p_g, g * p_g:(g + 1) * p_g]).sum()
            for g in range(n_graphs))
        assert np.isclose(np.abs(adj_f).sum(), blk_sum), \
            "adjacency has cross-graph edges; block-diagonal packing is invalid"

    x_np = np.zeros((n_groups, m_group, LANE), np.float32)
    a_np = np.zeros((n_groups, num_rel * m_group, m_group), np.float32)
    group_rows = []
    for ng in range(n_groups):
        g0, g1 = ng * gpg, min((ng + 1) * gpg, n_graphs)
        rows = (g1 - g0) * p_g
        group_rows.append(rows)
        x_np[ng, :rows, :f_in] = x_f[g0 * p_g: g0 * p_g + rows]
        for gl in range(g1 - g0):
            g = g0 + gl
            o = gl * p_g
            blk = adj_f[:, g * p_g:(g + 1) * p_g, g * p_g:(g + 1) * p_g]
            for r in range(num_rel):
                a_np[ng, r * m_group + o: r * m_group + o + p_g, o: o + p_g] = blk[r]

    xp = jnp.asarray(x_np.reshape(n_groups * m_group, LANE))
    # Host-side cast of A to the MXU dtype: no in-kernel copy/cast, half the DMA.
    ap = jnp.asarray(a_np.reshape(n_groups * num_rel * m_group, m_group),
                     dtype=mxu_dtype)

    inputs = [xp, ap]
    in_specs = [pl.BlockSpec((m_group, LANE), lambda g: (g, 0)),
                pl.BlockSpec((num_rel * m_group, m_group), lambda g: (g, 0))]

    def add_param(arr):
        inputs.append(arr)
        in_specs.append(pl.BlockSpec(arr.shape, lambda g: (0, 0)))  # resident, reused

    for layer in params["gnn"]:
        w_parts = [_pad2(layer["w_root"], LANE, LANE, mxu_dtype)]
        w_parts += [_pad2(layer["w_rel"][r], LANE, LANE, mxu_dtype)
                    for r in range(num_rel)]
        add_param(jnp.concatenate(w_parts, axis=0))     # [(R+1)*128, 128]
        add_param(_pad2(layer["b"], 1, LANE))
        add_param(_pad2(layer["gamma"], 1, LANE))       # zero-padded lanes stay 0
        add_param(_pad2(layer["beta"], 1, LANE))
    dense_cfg = []
    for layer in params["dense"]:
        add_param(_pad2(layer["w"], LANE, LANE, mxu_dtype))
        add_param(_pad2(layer["b"], 1, LANE))
        add_param(_pad2(layer["gamma"], 1, LANE))
        add_param(_pad2(layer["beta"], 1, LANE))
        dense_cfg.append((layer["w"].shape[1], layer["relu"], layer["layer_norm"]))

    n_gnn, n_dense = len(params["gnn"]), len(params["dense"])
    kern = functools.partial(
        _fused_rgcn_kernel, n_gnn=n_gnn, n_dense=n_dense, num_rel=num_rel,
        m_group=m_group, gnn_true_dim=hidden, dense_cfg=tuple(dense_cfg), cast=cast)

    # ---- VMEM budget: double-buffered blocks + resident params + intermediates ----
    param_bytes = sum(int(np.prod(a.shape)) * a.dtype.itemsize for a in inputs[2:])
    blk_bytes = (2 * m_group * LANE * 4                           # x
                 + 2 * num_rel * m_group * m_group * itemsize     # a_bd
                 + 2 * param_bytes                                # weights/biases
                 + 2 * 2 * m_group * LANE * 4)                    # emb + logits
    interm_bytes = (3 * num_rel * m_group * LANE * 4
                    + 6 * m_group * LANE * 4
                    + m_group * (num_rel + 1) * LANE * itemsize)
    vmem_limit = int(min(96 << 20, max(32 << 20,
                                       blk_bytes + interm_bytes + (2 << 20))))

    flops_grp = n_gnn * (2 * num_rel * m_group * m_group * LANE
                         + 2 * m_group * (num_rel + 1) * LANE * LANE)
    flops_grp += n_dense * 2 * m_group * LANE * LANE
    n_ln = n_gnn + sum(1 for c in dense_cfg if c[2])
    cost = pl.CostEstimate(
        flops=int(n_groups * flops_grp),
        transcendentals=int(n_groups * m_group * n_ln),
        bytes_accessed=int(sum(int(np.prod(a.shape)) * a.dtype.itemsize
                               for a in inputs)
                           + 2 * n_groups * m_group * LANE * 4))

    out_struct = jax.ShapeDtypeStruct((n_groups * m_group, LANE), jnp.float32)
    out_spec = pl.BlockSpec((m_group, LANE), lambda g: (g, 0))

    # TODO(synk): if profiling shows the A matmul is MXU-bound on v6e/v7x after the
    # bf16 + grouping changes, switch to the transposed (hT @ A_rT) formulation so
    # the MXU N dimension is m_group instead of 128 (256-wide MXU utilization).
    emb_p, logits_p = pl.pallas_call(
        kern,
        out_shape=(out_struct, out_struct),
        grid_spec=pltpu.PrefetchScalarGridSpec(
            num_scalar_prefetch=0,
            grid=(n_groups,),
            in_specs=in_specs,
            out_specs=[out_spec, out_spec]),
        compiler_params=pltpu.CompilerParams(
            dimension_semantics=("parallel",),   # groups independent -> 2 TCs on v7x
            vmem_limit_bytes=vmem_limit),
        cost_estimate=cost,
    )(*inputs)

    emb_p = emb_p.reshape(n_groups, m_group, LANE)
    logits_p = logits_p.reshape(n_groups, m_group, LANE)
    emb_parts, logit_parts = [], []
    for ng in range(n_groups):
        emb_parts.append(emb_p[ng, :group_rows[ng], :hidden])
        logit_parts.append(logits_p[ng, :group_rows[ng], :out_dim])
    embeddings = jnp.concatenate(emb_parts, axis=0)
    logits = jnp.concatenate(logit_parts, axis=0)
    preds = jnp.maximum(logits, 0.0)    # activate_logits = ReLU (dense head exists)

    # TODO(synk): posterior sampling (n_posterior_samples) and target mean/std
    # rescaling are disabled by the reference defaults (None); forward() also
    # never calls the pooling method, so both are omitted here.
    return {"preds": preds, "embeddings": embeddings, "logits": logits,
            "posterior": None}


# ----------------------------------------------------------------------------
# Pure-JAX reference (same math, unpadded, ungrouped) for a correctness check
# ----------------------------------------------------------------------------
def _dot_hi(a, b):
    return jnp.dot(a, b, precision=jax.lax.Precision.HIGHEST)


def _reference_forward(x, adj, params):
    h = x
    for layer in params["gnn"]:
        out = _dot_hi(h, layer["w_root"]) + layer["b"]
        for r in range(adj.shape[0]):
            out = out + _dot_hi(_dot_hi(adj[r], h), layer["w_rel"][r])
        h = jnp.maximum(out, 0.0)
        mean = jnp.mean(h, axis=-1, keepdims=True)
        var = jnp.mean((h - mean) ** 2, axis=-1, keepdims=True)
        h = (h - mean) * jax.lax.rsqrt(var + _LN_EPS) * layer["gamma"] + layer["beta"]
    emb = h
    z = emb
    for layer in params["dense"]:
        z = _dot_hi(z, layer["w"]) + layer["b"]
        if layer["relu"]:
            z = jnp.maximum(z, 0.0)
        if layer["layer_norm"]:
            mean = jnp.mean(z, axis=-1, keepdims=True)
            var = jnp.mean((z - mean) ** 2, axis=-1, keepdims=True)
            z = (z - mean) * jax.lax.rsqrt(var + _LN_EPS) * layer["gamma"] + layer["beta"]
    return emb, z, jnp.maximum(z, 0.0)


# ----------------------------------------------------------------------------
# Deterministic parameter / graph construction
# ----------------------------------------------------------------------------
def build_params(key, n_atom_types, hidden_dim, n_hidden_layers, num_relations,
                 dense_channels):
    params = {"gnn": [], "dense": []}
    for l in range(n_hidden_layers):
        fin = n_atom_types if l == 0 else hidden_dim
        key, k1, k2, k3 = jax.random.split(key, 4)
        params["gnn"].append({
            "w_rel": 0.1 * jax.random.normal(k1, (num_relations, fin, hidden_dim),
                                             jnp.float32),
            "w_root": 0.1 * jax.random.normal(k2, (fin, hidden_dim), jnp.float32),
            "b": 0.01 * jax.random.normal(k3, (1, hidden_dim), jnp.float32),
            "gamma": jnp.ones((1, hidden_dim), jnp.float32),
            "beta": jnp.zeros((1, hidden_dim), jnp.float32),
        })
    for l, ch in enumerate(dense_channels):
        fin = hidden_dim if l == 0 else dense_channels[l - 1]
        key, k1, k2 = jax.random.split(key, 3)
        is_last = (l + 1 == len(dense_channels))
        params["dense"].append({
            "w": 0.1 * jax.random.normal(k1, (fin, ch), jnp.float32),
            "b": 0.01 * jax.random.normal(k2, (1, ch), jnp.float32),
            "gamma": jnp.ones((1, ch), jnp.float32),
            "beta": jnp.zeros((1, ch), jnp.float32),
            "relu": not is_last,
            "layer_norm": not is_last,
        })
    return params


def build_dense_relational_adjacency(n_nodes, nodes_per_graph, num_relations):
    """Dense normalized adjacency A[r, i, j] = 1/deg_r(i) for edges j->i
    (block-diagonal per graph: graphs are disjoint)."""
    a = np.zeros((num_relations, n_nodes, n_nodes), dtype=np.float32)
    for i in range(n_nodes):
        g_off = (i // nodes_per_graph) * nodes_per_graph
        i_loc = i % nodes_per_graph
        for r in range(num_relations):
            j = g_off + (i_loc + r + 1) % nodes_per_graph
            a[r, i, j] += 1.0
            if r % 2 == 0:
                j2 = g_off + (i_loc + 2 * r + 3) % nodes_per_graph
                a[r, i, j2] += 1.0
    deg = a.sum(axis=-1, keepdims=True)
    a = np.where(deg > 0, a / np.maximum(deg, 1.0), 0.0).astype(np.float32)
    return jnp.asarray(a)


if __name__ == "__main__":
    # Small, module-consistent sizes
    n_atom_types = 16
    hidden_dim = 32
    n_hidden_layers = 2
    num_relations = 4
    dense_channels = [16, 4]
    n_graphs, nodes_per_graph = 2, 12
    n_nodes = n_graphs * nodes_per_graph

    key = jax.random.PRNGKey(0)
    key, kx, kp = jax.random.split(key, 3)

    # one-hot-ish node features (atom types)
    atom_ids = jax.random.randint(kx, (n_nodes,), 0, n_atom_types)
    x = jax.nn.one_hot(atom_ids, n_atom_types, dtype=jnp.float32)

    adj = build_dense_relational_adjacency(n_nodes, nodes_per_graph, num_relations)
    params = build_params(kp, n_atom_types, hidden_dim, n_hidden_layers,
                          num_relations, dense_channels)

    emb_ref, logits_ref, preds_ref = _reference_forward(x, adj, params)

    # f32 MXU-operand path: close match to the pure-JAX reference
    out32 = rgcn_forward(x, adj, params, nodes_per_graph, mxu_dtype=jnp.float32)
    jax.block_until_ready(out32["preds"])
    for got, ref in ((out32["embeddings"], emb_ref),
                     (out32["logits"], logits_ref),
                     (out32["preds"], preds_ref)):
        np.testing.assert_allclose(np.asarray(got), np.asarray(ref),
                                   rtol=1e-2, atol=1e-2)

    # default bf16 MXU-operand path (f32 accumulation / elementwise / LayerNorm)
    out = rgcn_forward(x, adj, params, nodes_per_graph)
    jax.block_until_ready(out["preds"])

    assert out["embeddings"].shape == (n_nodes, hidden_dim)
    assert out["logits"].shape == (n_nodes, dense_channels[-1])
    assert out["preds"].shape == (n_nodes, dense_channels[-1])
    for got, ref in ((out["embeddings"], emb_ref),
                     (out["logits"], logits_ref),
                     (out["preds"], preds_ref)):
        np.testing.assert_allclose(np.asarray(got), np.asarray(ref),
                                   rtol=5e-2, atol=5e-2)

    print("KERNEL_OK")
</pallas_src>

<mosaic_0001>
module attributes {stable_mosaic.version = 11 : i64} {
  func.func @_fused_rgcn_kernel(%arg0: i32, %arg1: memref<24x128xf32, #tpu.memory_space<vmem>>, %arg2: memref<96x24xf32, #tpu.memory_space<vmem>>, %arg3: memref<640x128xf32, #tpu.memory_space<vmem>>, %arg4: memref<1x128xf32, #tpu.memory_space<vmem>>, %arg5: memref<1x128xf32, #tpu.memory_space<vmem>>, %arg6: memref<1x128xf32, #tpu.memory_space<vmem>>, %arg7: memref<640x128xf32, #tpu.memory_space<vmem>>, %arg8: memref<1x128xf32, #tpu.memory_space<vmem>>, %arg9: memref<1x128xf32, #tpu.memory_space<vmem>>, %arg10: memref<1x128xf32, #tpu.memory_space<vmem>>, %arg11: memref<128x128xf32, #tpu.memory_space<vmem>>, %arg12: memref<1x128xf32, #tpu.memory_space<vmem>>, %arg13: memref<1x128xf32, #tpu.memory_space<vmem>>, %arg14: memref<1x128xf32, #tpu.memory_space<vmem>>, %arg15: memref<128x128xf32, #tpu.memory_space<vmem>>, %arg16: memref<1x128xf32, #tpu.memory_space<vmem>>, %arg17: memref<1x128xf32, #tpu.memory_space<vmem>>, %arg18: memref<1x128xf32, #tpu.memory_space<vmem>>, %arg19: memref<24x128xf32, #tpu.memory_space<vmem>>, %arg20: memref<24x128xf32, #tpu.memory_space<vmem>>) attributes {dimension_semantics = [#tpu.dimension_semantics<parallel>], iteration_bounds = array<i64: 1>, scalar_prefetch = 0 : i64, scratch_operands = 0 : i64, tpu.core_type = #tpu.core_type<tc>, window_params = [{transform_indices = @transform_0, window_bounds = array<i64: 24, 128>}, {transform_indices = @transform_1, window_bounds = array<i64: 96, 24>}, {pipeline_mode = #tpu.pipeline_mode<synchronous>, transform_indices = @transform_2, window_bounds = array<i64: 640, 128>}, {pipeline_mode = #tpu.pipeline_mode<synchronous>, transform_indices = @transform_3, window_bounds = array<i64: 1, 128>}, {pipeline_mode = #tpu.pipeline_mode<synchronous>, transform_indices = @transform_4, window_bounds = array<i64: 1, 128>}, {pipeline_mode = #tpu.pipeline_mode<synchronous>, transform_indices = @transform_5, window_bounds = array<i64: 1, 128>}, {pipeline_mode = #tpu.pipeline_mode<synchronous>, transform_indices = @transform_6, window_bounds = array<i64: 640, 128>}, {pipeline_mode = #tpu.pipeline_mode<synchronous>, transform_indices = @transform_7, window_bounds = array<i64: 1, 128>}, {pipeline_mode = #tpu.pipeline_mode<synchronous>, transform_indices = @transform_8, window_bounds = array<i64: 1, 128>}, {pipeline_mode = #tpu.pipeline_mode<synchronous>, transform_indices = @transform_9, window_bounds = array<i64: 1, 128>}, {pipeline_mode = #tpu.pipeline_mode<synchronous>, transform_indices = @transform_10, window_bounds = array<i64: 128, 128>}, {pipeline_mode = #tpu.pipeline_mode<synchronous>, transform_indices = @transform_11, window_bounds = array<i64: 1, 128>}, {pipeline_mode = #tpu.pipeline_mode<synchronous>, transform_indices = @transform_12, window_bounds = array<i64: 1, 128>}, {pipeline_mode = #tpu.pipeline_mode<synchronous>, transform_indices = @transform_13, window_bounds = array<i64: 1, 128>}, {pipeline_mode = #tpu.pipeline_mode<synchronous>, transform_indices = @transform_14, window_bounds = array<i64: 128, 128>}, {pipeline_mode = #tpu.pipeline_mode<synchronous>, transform_indices = @transform_15, window_bounds = array<i64: 1, 128>}, {pipeline_mode = #tpu.pipeline_mode<synchronous>, transform_indices = @transform_16, window_bounds = array<i64: 1, 128>}, {pipeline_mode = #tpu.pipeline_mode<synchronous>, transform_indices = @transform_17, window_bounds = array<i64: 1, 128>}, {transform_indices = @transform_18, window_bounds = array<i64: 24, 128>}, {transform_indices = @transform_19, window_bounds = array<i64: 24, 128>}]} {
    %c0 = arith.constant 0 : index
    %c0_0 = arith.constant 0 : index
    %0 = vector.load %arg2[%c0, %c0_0] : memref<96x24xf32, #tpu.memory_space<vmem>>, vector<96x24xf32>
    %c0_1 = arith.constant 0 : index
    %c0_2 = arith.constant 0 : index
    %1 = vector.load %arg1[%c0_1, %c0_2] : memref<24x128xf32, #tpu.memory_space<vmem>>, vector<24x128xf32>
    %cst = arith.constant dense<0.000000e+00> : vector<96x128xf32>
    %2 = tpu.matmul %0, %1, %cst {dimension_numbers = #tpu.dot_dimension_numbers<[1], [0], [0], [1], [0, 0, 1, 1], [], []>} : vector<96x24xf32>, vector<24x128xf32>, vector<96x128xf32> -> vector<96x128xf32>
    %3 = vector.extract_strided_slice %2 {offsets = [0, 0], sizes = [24, 128], strides = [1, 1]} : vector<96x128xf32> to vector<24x128xf32>
    %4 = vector.extract_strided_slice %2 {offsets = [24, 0], sizes = [24, 128], strides = [1, 1]} : vector<96x128xf32> to vector<24x128xf32>
    %5 = vector.extract_strided_slice %2 {offsets = [48, 0], sizes = [24, 128], strides = [1, 1]} : vector<96x128xf32> to vector<24x128xf32>
    %6 = vector.extract_strided_slice %2 {offsets = [72, 0], sizes = [24, 128], strides = [1, 1]} : vector<96x128xf32> to vector<24x128xf32>
    %7 = tpu.concatenate %1, %3, %4, %5, %6 in 1 : vector<24x128xf32>, vector<24x128xf32>, vector<24x128xf32>, vector<24x128xf32>, vector<24x128xf32> -> vector<24x640xf32>
    %c0_3 = arith.constant 0 : index
    %c0_4 = arith.constant 0 : index
    %8 = vector.load %arg3[%c0_3, %c0_4] : memref<640x128xf32, #tpu.memory_space<vmem>>, vector<640x128xf32>
    %cst_5 = arith.constant dense<0.000000e+00> : vector<24x128xf32>
    %9 = tpu.matmul %7, %8, %cst_5 {dimension_numbers = #tpu.dot_dimension_numbers<[1], [0], [0], [1], [0, 0, 1, 1], [], []>} : vector<24x640xf32>, vector<640x128xf32>, vector<24x128xf32> -> vector<24x128xf32>
    %c0_6 = arith.constant 0 : index
    %c0_7 = arith.constant 0 : index
    %10 = vector.load %arg4[%c0_6, %c0_7] : memref<1x128xf32, #tpu.memory_space<vmem>>, vector<1x128xf32>
    %11 = vector.broadcast %10 : vector<1x128xf32> to vector<24x128xf32>
    %12 = arith.addf %9, %11 : vector<24x128xf32>
    %cst_8 = arith.constant 0.000000e+00 : f32
    %13 = vector.broadcast %cst_8 : f32 to vector<24x128xf32>
    %14 = arith.maximumf %12, %13 : vector<24x128xf32>
    %c0_9 = arith.constant 0 : index
    %c0_10 = arith.constant 0 : index
    %15 = vector.load %arg5[%c0_9, %c0_10] : memref<1x128xf32, #tpu.memory_space<vmem>>, vector<1x128xf32>
    %c0_11 = arith.constant 0 : index
    %c0_12 = arith.constant 0 : index
    %16 = vector.load %arg6[%c0_11, %c0_12] : memref<1x128xf32, #tpu.memory_space<vmem>>, vector<1x128xf32>
    %cst_13 = arith.constant dense<0.000000e+00> : vector<24xf32>
    %17 = vector.multi_reduction <add>, %14, %cst_13 [1] : vector<24x128xf32> to vector<24xf32>
    %18 = vector.shape_cast %17 : vector<24xf32> to vector<24x1xf32>
    %cst_14 = arith.constant 3.125000e-02 : f32
    %19 = vector.broadcast %cst_14 : f32 to vector<24x1xf32>
    %20 = arith.mulf %18, %19 : vector<24x1xf32>
    %21 = tpu.iota {dimensions = array<i32: 1>} : vector<24x128xi32>
    %c32_i32 = arith.constant 32 : i32
    %22 = vector.broadcast %c32_i32 : i32 to vector<24x128xi32>
    %23 = arith.cmpi slt, %21, %22 : vector<24x128xi32>
    %24 = vector.broadcast %20 : vector<24x1xf32> to vector<24x128xf32>
    %25 = arith.subf %14, %24 : vector<24x128xf32>
    %cst_15 = arith.constant 0.000000e+00 : f32
    %26 = vector.broadcast %cst_15 : f32 to vector<24x128xf32>
    %27 = arith.select %23, %25, %26 : vector<24x128xi1>, vector<24x128xf32>
    %28 = arith.mulf %27, %27 : vector<24x128xf32>
    %cst_16 = arith.constant dense<0.000000e+00> : vector<24xf32>
    %29 = vector.multi_reduction <add>, %28, %cst_16 [1] : vector<24x128xf32> to vector<24xf32>
    %30 = vector.shape_cast %29 : vector<24xf32> to vector<24x1xf32>
    %cst_17 = arith.constant 3.125000e-02 : f32
    %31 = vector.broadcast %cst_17 : f32 to vector<24x1xf32>
    %32 = arith.mulf %30, %31 : vector<24x1xf32>
    %cst_18 = arith.constant 9.99999974E-6 : f32
    %33 = vector.broadcast %cst_18 : f32 to vector<24x1xf32>
    %34 = arith.addf %32, %33 : vector<24x1xf32>
    %35 = math.rsqrt %34 : vector<24x1xf32>
    %36 = vector.broadcast %35 : vector<24x1xf32> to vector<24x128xf32>
    %37 = arith.mulf %27, %36 : vector<24x128xf32>
    %38 = vector.broadcast %15 : vector<1x128xf32> to vector<24x128xf32>
    %39 = arith.mulf %37, %38 : vector<24x128xf32>
    %40 = vector.broadcast %16 : vector<1x128xf32> to vector<24x128xf32>
    %41 = arith.addf %39, %40 : vector<24x128xf32>
    %cst_19 = arith.constant dense<0.000000e+00> : vector<96x128xf32>
    %42 = tpu.matmul %0, %41, %cst_19 {dimension_numbers = #tpu.dot_dimension_numbers<[1], [0], [0], [1], [0, 0, 1, 1], [], []>} : vector<96x24xf32>, vector<24x128xf32>, vector<96x128xf32> -> vector<96x128xf32>
    %43 = vector.extract_strided_slice %42 {offsets = [0, 0], sizes = [24, 128], strides = [1, 1]} : vector<96x128xf32> to vector<24x128xf32>
    %44 = vector.extract_strided_slice %42 {offsets = [24, 0], sizes = [24, 128], strides = [1, 1]} : vector<96x128xf32> to vector<24x128xf32>
    %45 = vector.extract_strided_slice %42 {offsets = [48, 0], sizes = [24, 128], strides = [1, 1]} : vector<96x128xf32> to vector<24x128xf32>
    %46 = vector.extract_strided_slice %42 {offsets = [72, 0], sizes = [24, 128], strides = [1, 1]} : vector<96x128xf32> to vector<24x128xf32>
    %47 = tpu.concatenate %41, %43, %44, %45, %46 in 1 : vector<24x128xf32>, vector<24x128xf32>, vector<24x128xf32>, vector<24x128xf32>, vector<24x128xf32> -> vector<24x640xf32>
    %c0_20 = arith.constant 0 : index
    %c0_21 = arith.constant 0 : index
    %48 = vector.load %arg7[%c0_20, %c0_21] : memref<640x128xf32, #tpu.memory_space<vmem>>, vector<640x128xf32>
    %cst_22 = arith.constant dense<0.000000e+00> : vector<24x128xf32>
    %49 = tpu.matmul %47, %48, %cst_22 {dimension_numbers = #tpu.dot_dimension_numbers<[1], [0], [0], [1], [0, 0, 1, 1], [], []>} : vector<24x640xf32>, vector<640x128xf32>, vector<24x128xf32> -> vector<24x128xf32>
    %c0_23 = arith.constant 0 : index
    %c0_24 = arith.constant 0 : index
    %50 = vector.load %arg8[%c0_23, %c0_24] : memref<1x128xf32, #tpu.memory_space<vmem>>, vector<1x128xf32>
    %51 = vector.broadcast %50 : vector<1x128xf32> to vector<24x128xf32>
    %52 = arith.addf %49, %51 : vector<24x128xf32>
    %cst_25 = arith.constant 0.000000e+00 : f32
    %53 = vector.broadcast %cst_25 : f32 to vector<24x128xf32>
    %54 = arith.maximumf %52, %53 : vector<24x128xf32>
    %c0_26 = arith.constant 0 : index
    %c0_27 = arith.constant 0 : index
    %55 = vector.load %arg9[%c0_26, %c0_27] : memref<1x128xf32, #tpu.memory_space<vmem>>, vector<1x128xf32>
    %c0_28 = arith.constant 0 : index
    %c0_29 = arith.constant 0 : index
    %56 = vector.load %arg10[%c0_28, %c0_29] : memref<1x128xf32, #tpu.memory_space<vmem>>, vector<1x128xf32>
    %cst_30 = arith.constant dense<0.000000e+00> : vector<24xf32>
    %57 = vector.multi_reduction <add>, %54, %cst_30 [1] : vector<24x128xf32> to vector<24xf32>
    %58 = vector.shape_cast %57 : vector<24xf32> to vector<24x1xf32>
    %cst_31 = arith.constant 3.125000e-02 : f32
    %59 = vector.broadcast %cst_31 : f32 to vector<24x1xf32>
    %60 = arith.mulf %58, %59 : vector<24x1xf32>
    %61 = tpu.iota {dimensions = array<i32: 1>} : vector<24x128xi32>
    %c32_i32_32 = arith.constant 32 : i32
    %62 = vector.broadcast %c32_i32_32 : i32 to vector<24x128xi32>
    %63 = arith.cmpi slt, %61, %62 : vector<24x128xi32>
    %64 = vector.broadcast %60 : vector<24x1xf32> to vector<24x128xf32>
    %65 = arith.subf %54, %64 : vector<24x128xf32>
    %cst_33 = arith.constant 0.000000e+00 : f32
    %66 = vector.broadcast %cst_33 : f32 to vector<24x128xf32>
    %67 = arith.select %63, %65, %66 : vector<24x128xi1>, vector<24x128xf32>
    %68 = arith.mulf %67, %67 : vector<24x128xf32>
    %cst_34 = arith.constant dense<0.000000e+00> : vector<24xf32>
    %69 = vector.multi_reduction <add>, %68, %cst_34 [1] : vector<24x128xf32> to vector<24xf32>
    %70 = vector.shape_cast %69 : vector<24xf32> to vector<24x1xf32>
    %cst_35 = arith.constant 3.125000e-02 : f32
    %71 = vector.broadcast %cst_35 : f32 to vector<24x1xf32>
    %72 = arith.mulf %70, %71 : vector<24x1xf32>
    %cst_36 = arith.constant 9.99999974E-6 : f32
    %73 = vector.broadcast %cst_36 : f32 to vector<24x1xf32>
    %74 = arith.addf %72, %73 : vector<24x1xf32>
    %75 = math.rsqrt %74 : vector<24x1xf32>
    %76 = vector.broadcast %75 : vector<24x1xf32> to vector<24x128xf32>
    %77 = arith.mulf %67, %76 : vector<24x128xf32>
    %78 = vector.broadcast %55 : vector<1x128xf32> to vector<24x128xf32>
    %79 = arith.mulf %77, %78 : vector<24x128xf32>
    %80 = vector.broadcast %56 : vector<1x128xf32> to vector<24x128xf32>
    %81 = arith.addf %79, %80 : vector<24x128xf32>
    %c0_37 = arith.constant 0 : index
    %c0_38 = arith.constant 0 : index
    %82 = vector.load %arg19[%c0_37, %c0_38] : memref<24x128xf32, #tpu.memory_space<vmem>>, vector<24x128xf32>
    tpu.vector_store %arg19[%c0_37, %c0_38], %81 {strides = array<i32>} : memref<24x128xf32, #tpu.memory_space<vmem>>, vector<24x128xf32>,
    %c0_39 = arith.constant 0 : index
    %c0_40 = arith.constant 0 : index
    %83 = vector.load %arg11[%c0_39, %c0_40] : memref<128x128xf32, #tpu.memory_space<vmem>>, vector<128x128xf32>
    %cst_41 = arith.constant dense<0.000000e+00> : vector<24x128xf32>
    %84 = tpu.matmul %81, %83, %cst_41 {dimension_numbers = #tpu.dot_dimension_numbers<[1], [0], [0], [1], [0, 0, 1, 1], [], []>} : vector<24x128xf32>, vector<128x128xf32>, vector<24x128xf32> -> vector<24x128xf32>
    %c0_42 = arith.constant 0 : index
    %c0_43 = arith.constant 0 : index
    %85 = vector.load %arg12[%c0_42, %c0_43] : memref<1x128xf32, #tpu.memory_space<vmem>>, vector<1x128xf32>
    %86 = vector.broadcast %85 : vector<1x128xf32> to vector<24x128xf32>
    %87 = arith.addf %84, %86 : vector<24x128xf32>
    %cst_44 = arith.constant 0.000000e+00 : f32
    %88 = vector.broadcast %cst_44 : f32 to vector<24x128xf32>
    %89 = arith.maximumf %87, %88 : vector<24x128xf32>
    %c0_45 = arith.constant 0 : index
    %c0_46 = arith.constant 0 : index
    %90 = vector.load %arg13[%c0_45, %c0_46] : memref<1x128xf32, #tpu.memory_space<vmem>>, vector<1x128xf32>
    %c0_47 = arith.constant 0 : index
    %c0_48 = arith.constant 0 : index
    %91 = vector.load %arg14[%c0_47, %c0_48] : memref<1x128xf32, #tpu.memory_space<vmem>>, vector<1x128xf32>
    %cst_49 = arith.constant dense<0.000000e+00> : vector<24xf32>
    %92 = vector.multi_reduction <add>, %89, %cst_49 [1] : vector<24x128xf32> to vector<24xf32>
    %93 = vector.shape_cast %92 : vector<24xf32> to vector<24x1xf32>
    %cst_50 = arith.constant 6.250000e-02 : f32
    %94 = vector.broadcast %cst_50 : f32 to vector<24x1xf32>
    %95 = arith.mulf %93, %94 : vector<24x1xf32>
    %96 = tpu.iota {dimensions = array<i32: 1>} : vector<24x128xi32>
    %c16_i32 = arith.constant 16 : i32
    %97 = vector.broadcast %c16_i32 : i32 to vector<24x128xi32>
    %98 = arith.cmpi slt, %96, %97 : vector<24x128xi32>
    %99 = vector.broadcast %95 : vector<24x1xf32> to vector<24x128xf32>
    %100 = arith.subf %89, %99 : vector<24x128xf32>
    %cst_51 = arith.constant 0.000000e+00 : f32
    %101 = vector.broadcast %cst_51 : f32 to vector<24x128xf32>
    %102 = arith.select %98, %100, %101 : vector<24x128xi1>, vector<24x128xf32>
    %103 = arith.mulf %102, %102 : vector<24x128xf32>
    %cst_52 = arith.constant dense<0.000000e+00> : vector<24xf32>
    %104 = vector.multi_reduction <add>, %103, %cst_52 [1] : vector<24x128xf32> to vector<24xf32>
    %105 = vector.shape_cast %104 : vector<24xf32> to vector<24x1xf32>
    %cst_53 = arith.constant 6.250000e-02 : f32
    %106 = vector.broadcast %cst_53 : f32 to vector<24x1xf32>
    %107 = arith.mulf %105, %106 : vector<24x1xf32>
    %cst_54 = arith.constant 9.99999974E-6 : f32
    %108 = vector.broadcast %cst_54 : f32 to vector<24x1xf32>
    %109 = arith.addf %107, %108 : vector<24x1xf32>
    %110 = math.rsqrt %109 : vector<24x1xf32>
    %111 = vector.broadcast %110 : vector<24x1xf32> to vector<24x128xf32>
    %112 = arith.mulf %102, %111 : vector<24x128xf32>
    %113 = vector.broadcast %90 : vector<1x128xf32> to vector<24x128xf32>
    %114 = arith.mulf %112, %113 : vector<24x128xf32>
    %115 = vector.broadcast %91 : vector<1x128xf32> to vector<24x128xf32>
    %116 = arith.addf %114, %115 : vector<24x128xf32>
    %c0_55 = arith.constant 0 : index
    %c0_56 = arith.constant 0 : index
    %117 = vector.load %arg15[%c0_55, %c0_56] : memref<128x128xf32, #tpu.memory_space<vmem>>, vector<128x128xf32>
    %cst_57 = arith.constant dense<0.000000e+00> : vector<24x128xf32>
    %118 = tpu.matmul %116, %117, %cst_57 {dimension_numbers = #tpu.dot_dimension_numbers<[1], [0], [0], [1], [0, 0, 1, 1], [], []>} : vector<24x128xf32>, vector<128x128xf32>, vector<24x128xf32> -> vector<24x128xf32>
    %c0_58 = arith.constant 0 : index
    %c0_59 = arith.constant 0 : index
    %119 = vector.load %arg16[%c0_58, %c0_59] : memref<1x128xf32, #tpu.memory_space<vmem>>, vector<1x128xf32>
    %120 = vector.broadcast %119 : vector<1x128xf32> to vector<24x128xf32>
    %121 = arith.addf %118, %120 : vector<24x128xf32>
    %c0_60 = arith.constant 0 : index
    %c0_61 = arith.constant 0 : index
    %122 = vector.load %arg20[%c0_60, %c0_61] : memref<24x128xf32, #tpu.memory_space<vmem>>, vector<24x128xf32>
    tpu.vector_store %arg20[%c0_60, %c0_61], %121 {strides = array<i32>} : memref<24x128xf32, #tpu.memory_space<vmem>>, vector<24x128xf32>,
    return
  }
  func.func @transform_0(%arg0: i32) -> (i32, i32) {
    %c0_i32 = arith.constant 0 : i32
    %c0_i32_0 = arith.constant 0 : i32
    return %arg0, %c0_i32 : i32, i32
  }
  func.func @transform_1(%arg0: i32) -> (i32, i32) {
    %c0_i32 = arith.constant 0 : i32
    %c0_i32_0 = arith.constant 0 : i32
    return %arg0, %c0_i32 : i32, i32
  }
  func.func @transform_2(%arg0: i32) -> (i32, i32) {
    %c0_i32 = arith.constant 0 : i32
    %c0_i32_0 = arith.constant 0 : i32
    %c0_i32_1 = arith.constant 0 : i32
    return %c0_i32, %c0_i32_0 : i32, i32
  }
  func.func @transform_3(%arg0: i32) -> (i32, i32) {
    %c0_i32 = arith.constant 0 : i32
    %c0_i32_0 = arith.constant 0 : i32
    %c0_i32_1 = arith.constant 0 : i32
    return %c0_i32, %c0_i32_0 : i32, i32
  }
  func.func @transform_4(%arg0: i32) -> (i32, i32) {
    %c0_i32 = arith.constant 0 : i32
    %c0_i32_0 = arith.constant 0 : i32
    %c0_i32_1 = arith.constant 0 : i32
    return %c0_i32, %c0_i32_0 : i32, i32
  }
  func.func @transform_5(%arg0: i32) -> (i32, i32) {
    %c0_i32 = arith.constant 0 : i32
    %c0_i32_0 = arith.constant 0 : i32
    %c0_i32_1 = arith.constant 0 : i32
    return %c0_i32, %c0_i32_0 : i32, i32
  }
  func.func @transform_6(%arg0: i32) -> (i32, i32) {
    %c0_i32 = arith.constant 0 : i32
    %c0_i32_0 = arith.constant 0 : i32
    %c0_i32_1 = arith.constant 0 : i32
    return %c0_i32, %c0_i32_0 : i32, i32
  }
  func.func @transform_7(%arg0: i32) -> (i32, i32) {
    %c0_i32 = arith.constant 0 : i32
    %c0_i32_0 = arith.constant 0 : i32
    %c0_i32_1 = arith.constant 0 : i32
    return %c0_i32, %c0_i32_0 : i32, i32
  }
  func.func @transform_8(%arg0: i32) -> (i32, i32) {
    %c0_i32 = arith.constant 0 : i32
    %c0_i32_0 = arith.constant 0 : i32
    %c0_i32_1 = arith.constant 0 : i32
    return %c0_i32, %c0_i32_0 : i32, i32
  }
  func.func @transform_9(%arg0: i32) -> (i32, i32) {
    %c0_i32 = arith.constant 0 : i32
    %c0_i32_0 = arith.constant 0 : i32
    %c0_i32_1 = arith.constant 0 : i32
    return %c0_i32, %c0_i32_0 : i32, i32
  }
  func.func @transform_10(%arg0: i32) -> (i32, i32) {
    %c0_i32 = arith.constant 0 : i32
    %c0_i32_0 = arith.constant 0 : i32
    %c0_i32_1 = arith.constant 0 : i32
    return %c0_i32, %c0_i32_0 : i32, i32
  }
  func.func @transform_11(%arg0: i32) -> (i32, i32) {
    %c0_i32 = arith.constant 0 : i32
    %c0_i32_0 = arith.constant 0 : i32
    %c0_i32_1 = arith.constant 0 : i32
    return %c0_i32, %c0_i32_0 : i32, i32
  }
  func.func @transform_12(%arg0: i32) -> (i32, i32) {
    %c0_i32 = arith.constant 0 : i32
    %c0_i32_0 = arith.constant 0 : i32
    %c0_i32_1 = arith.constant 0 : i32
    return %c0_i32, %c0_i32_0 : i32, i32
  }
  func.func @transform_13(%arg0: i32) -> (i32, i32) {
    %c0_i32 = arith.constant 0 : i32
    %c0_i32_0 = arith.constant 0 : i32
    %c0_i32_1 = arith.constant 0 : i32
    return %c0_i32, %c0_i32_0 : i32, i32
  }
  func.func @transform_14(%arg0: i32) -> (i32, i32) {
    %c0_i32 = arith.constant 0 : i32
    %c0_i32_0 = arith.constant 0 : i32
    %c0_i32_1 = arith.constant 0 : i32
    return %c0_i32, %c0_i32_0 : i32, i32
  }
  func.func @transform_15(%arg0: i32) -> (i32, i32) {
    %c0_i32 = arith.constant 0 : i32
    %c0_i32_0 = arith.constant 0 : i32
    %c0_i32_1 = arith.constant 0 : i32
    return %c0_i32, %c0_i32_0 : i32, i32
  }
  func.func @transform_16(%arg0: i32) -> (i32, i32) {
    %c0_i32 = arith.constant 0 : i32
    %c0_i32_0 = arith.constant 0 : i32
    %c0_i32_1 = arith.constant 0 : i32
    return %c0_i32, %c0_i32_0 : i32, i32
  }
  func.func @transform_17(%arg0: i32) -> (i32, i32) {
    %c0_i32 = arith.constant 0 : i32
    %c0_i32_0 = arith.constant 0 : i32
    %c0_i32_1 = arith.constant 0 : i32
    return %c0_i32, %c0_i32_0 : i32, i32
  }
  func.func @transform_18(%arg0: i32) -> (i32, i32) {
    %c0_i32 = arith.constant 0 : i32
    %c0_i32_0 = arith.constant 0 : i32
    return %arg0, %c0_i32 : i32, i32
  }
  func.func @transform_19(%arg0: i32) -> (i32, i32) {
    %c0_i32 = arith.constant 0 : i32
    %c0_i32_0 = arith.constant 0 : i32
    return %arg0, %c0_i32 : i32, i32
  }
}

</mosaic_0001>

<bundles_post_ra>
// kernel: tpu_custom_call.1
= control target key start
LH: loop header
LB: loop body
LE: loop exit
PB: predicated region body
PF: predicated region fallthrough
CT: control target
= control target key end

     0   :  { %s2921_s0 = inlined_call_operand.vmem [shape: f32[24,128], index: 0, kind: input, shape index: {}]   ;;  %s2922_s1 = inlined_call_operand.vmem [shape: f32[96,24], index: 1, kind: input, shape index: {}]   ;;  %s2923_s2 = inlined_call_operand.hbm [shape: f32[640,128], index: 2, kind: input, shape index: {}]   ;;  %s2924_s3 = inlined_call_operand.vmem [shape: f32[1,128], index: 3, kind: input, shape index: {}]   ;;  %s2925_s4 = inlined_call_operand.vmem [shape: f32[1,128], index: 4, kind: input, shape index: {}]   ;;  %s2926_s5 = inlined_call_operand.vmem [shape: f32[1,128], index: 5, kind: input, shape index: {}]   ;;  %s2927_s6 = inlined_call_operand.hbm [shape: f32[640,128], index: 6, kind: input, shape index: {}]   ;;  %s2928_s7 = inlined_call_operand.vmem [shape: f32[1,128], index: 7, kind: input, shape index: {}]   ;;  %s2929_s8 = inlined_call_operand.vmem [shape: f32[1,128], index: 8, kind: input, shape index: {}]   ;;  %s2930_s9 = inlined_call_operand.hbm [shape: f32[1,128], index: 9, kind: input, shape index: {}]   ;;  %s2931_s10 = inlined_call_operand.vmem [shape: f32[128,128], index: 10, kind: input, shape index: {}]   ;;  %s2932_s11 = inlined_call_operand.vmem [shape: f32[1,128], index: 11, kind: input, shape index: {}]   ;;  %s2933_s12 = inlined_call_operand.vmem [shape: f32[1,128], index: 12, kind: input, shape index: {}]   ;;  %s2934_s13 = inlined_call_operand.vmem [shape: f32[1,128], index: 13, kind: input, shape index: {}]   ;;  %s2935_s14 = inlined_call_operand.hbm [shape: f32[128,128], index: 14, kind: input, shape index: {}]   ;;  %s2936_s15 = inlined_call_operand.vmem [shape: f32[1,128], index: 15, kind: input, shape index: {}]   ;;  %s2937_s16 = inlined_call_operand.vmem [shape: f32[1,128], index: 16, kind: input, shape index: {}]   ;;  %s2938_s17 = inlined_call_operand.vmem [shape: f32[1,128], index: 17, kind: input, shape index: {}]   ;;  %s2939_s18 = inlined_call_operand.hbm [shape: f32[24,128], index: 18, kind: output, shape index: {0}]   ;;  %s2940_s19 = inlined_call_operand.hbm [shape: f32[24,128], index: 19, kind: output, shape index: {1}]  }
   0x1   :  { %2944 = sst [smem:[#allocation18_spill]] %s2921_s0 }
   0x2   :  { %2945 = sst [smem:[#allocation19_spill]] %s2922_s1 }
   0x3   :  { %2946 = sst [smem:[#allocation20_spill]] %s2923_s2 }
   0x4   :  { %2947 = sst [smem:[#allocation21_spill]] %s2924_s3 }
   0x5   :  { %25 = vsyncpa [#allocation3], 0 }
   0x6   :  { %26 = vsyncpa [#allocation6], 0 }
   0x7   :  { %27 = vsyncpa [#allocation9], 0 }
   0x8   :  { %28 = vsyncpa [#allocation4], 0 }
   0x9   :  { %29 = vsyncpa [#allocation12], 0  ;;  %s2419_s0 = smov [#allocation5]   ;;  %s2420_s20 = smov [#allocation2]  }
   0xa   :  { %s57_s30 = sshll.u32 %s2419_s0, 4  ;;  %s39_s21 = sshll.u32 %s2420_s20, 4  ;;  %s58_s30 = int_to_ptr.vmem [resolvable:$true] %s57_s30  ;;  %s2530_s21 = int_to_ptr.vmem [resolvable:$true] %s39_s21 }
   0xb   :  { %s2277_s1 = scalar_lea.hbm %s2927_s6, 10240 }
   0xc   :  { %p2278_p0 = scmp.ne.s32.totalorder %s2927_s6, %s2277_s1  ;;  %p2281_p1 = scmp.lt.u32.totalorder %s2277_s1, %s2927_s6 }
   0xe   :  { %p2283_p2 = pnand %p2281_p1, %p2278_p0 }
  0x10   :  { %2286 = shalt.err (!%p2283_p2)
}
  0x11   :  { %s2287_s25 = scalar_lea.vmem %s58_s30, 10240  ;;  %p2292_p4 = scmp.lt.s32.totalorder %s58_s30, %s58_s30 }
  0x12   :  { %p2288_p3 = scmp.ne.s32.totalorder %s58_s30, %s2287_s25  ;;  %p2293_p5 = scmp.lt.s32.totalorder %s2287_s25, %s2287_s25 }
  0x14   :  { %p2294_p6 = por %p2293_p5, %p2292_p4 }
  0x16   :  { %p2295_p7 = pnand %p2294_p6, %p2288_p3 }
  0x18   :  { %2298 = shalt.err (!%p2295_p7)
}
  0x19   :  { %s2421_s3 = smov 128   ;;  %s2422_s26 = smov 8  }
  0x1a   :  { %63 = dma.hbm_to_vmem [thread:$0]  %s2927_s6, 10240, %s58_s30, [#allocation6], %s2421_s3, %s2421_s3, %s2422_s26  }
  0x1b   :  { %s2948_s20 = sld [smem:[#allocation20_spill]] }
  0x21   :  { %s2299_s16 = scalar_lea.hbm %s2948_s20, 10240 }
  0x22   :  { %p2300_p8 = scmp.ne.s32.totalorder %s2948_s20, %s2299_s16  ;;  %p2303_p9 = scmp.lt.u32.totalorder %s2299_s16, %s2948_s20 }
  0x24   :  { %p2305_p10 = pnand %p2303_p9, %p2300_p8 }
  0x26   :  { %2308 = shalt.err (!%p2305_p10)
}
  0x27   :  { %s2309_s23 = scalar_lea.vmem %s2530_s21, 10240  ;;  %p2314_p12 = scmp.lt.s32.totalorder %s2530_s21, %s2530_s21 }
  0x28   :  { %p2310_p11 = scmp.ne.s32.totalorder %s2530_s21, %s2309_s23  ;;  %p2315_p13 = scmp.lt.s32.totalorder %s2309_s23, %s2309_s23 }
  0x2a   :  { %p2316_p0 = por %p2315_p13, %p2314_p12 }
  0x2c   :  { %p2317_p1 = pnand %p2316_p0, %p2310_p11 }
  0x2e   :  { %2320 = shalt.err (!%p2317_p1)
}
  0x2f   :  { %45 = dma.hbm_to_vmem [thread:$0]  %s2948_s20, 10240, %s2530_s21, [#allocation3], %s2421_s3, %s2421_s3, %s2422_s26  }
  0x30   :  { %s2423_s24 = smov [#allocation7]   ;;  %s2424_s27 = smov [#allocation8]  }
  0x31   :  { %s74_s25 = sshll.u32 %s2423_s24, 4  ;;  %s91_s28 = sshll.u32 %s2424_s27, 4  ;;  %s75_s25 = int_to_ptr.vmem [resolvable:$true] %s74_s25  ;;  %s2567_s28 = int_to_ptr.vmem [resolvable:$true] %s91_s28 }
  0x32   :  { %s2321_s16 = scalar_lea.hbm %s2930_s9, 16 }
  0x33   :  { %p2322_p2 = scmp.ne.s32.totalorder %s2930_s9, %s2321_s16  ;;  %p2325_p3 = scmp.lt.u32.totalorder %s2321_s16, %s2930_s9 }
  0x35   :  { %p2327_p4 = pnand %p2325_p3, %p2322_p2 }
  0x37   :  { %2330 = shalt.err (!%p2327_p4)
}
  0x38   :  { %s2331_s21 = scalar_lea.vmem %s75_s25, 16  ;;  %s2335_s20 = scalar_lea.vmem %s75_s25, 32 }
  0x39   :  { %p2332_p5 = scmp.ne.s32.totalorder %s75_s25, %s2331_s21  ;;  %p2336_p6 = scmp.lt.s32.totalorder %s75_s25, %s75_s25 }
  0x3a   :  { %p2337_p7 = scmp.lt.s32.totalorder %s2335_s20, %s2331_s21 }
  0x3c   :  { %p2338_p8 = por %p2337_p7, %p2336_p6 }
  0x3e   :  { %p2339_p9 = pnand %p2338_p8, %p2332_p5 }
  0x40   :  { %2342 = shalt.err (!%p2339_p9)
}
  0x41   :  { %77 = dma.hbm_to_vmem [thread:$0]  %s2930_s9, 16, %s75_s25, [#allocation6]  }
  0x42   :  { %s2343_s27 = scalar_lea.hbm %s2935_s14, 2048 }
  0x43   :  { %p2344_p10 = scmp.ne.s32.totalorder %s2935_s14, %s2343_s27  ;;  %p2347_p11 = scmp.lt.u32.totalorder %s2343_s27, %s2935_s14 }
  0x45   :  { %p2349_p12 = pnand %p2347_p11, %p2344_p10 }
  0x47   :  { %2352 = shalt.err (!%p2349_p12)
}
  0x48   :  { %s2353_s1 = scalar_lea.vmem %s2567_s28, 2048  ;;  %p2358_p0 = scmp.lt.s32.totalorder %s2567_s28, %s2567_s28 }
  0x49   :  { %p2354_p13 = scmp.ne.s32.totalorder %s2567_s28, %s2353_s1  ;;  %p2359_p1 = scmp.lt.s32.totalorder %s2353_s1, %s2353_s1 }
  0x4b   :  { %p2360_p2 = por %p2359_p1, %p2358_p0 }
  0x4d   :  { %p2361_p3 = pnand %p2360_p2, %p2354_p13 }
  0x4f   :  { %2364 = shalt.err (!%p2361_p3)
}
  0x50   :  { %97 = dma.hbm_to_vmem [thread:$0]  %s2935_s14, 2048, %s2567_s28, [#allocation9], %s2421_s3, %s2421_s3, %s2422_s26  }
  0x51   :  { %2409 = dma.done.wait [#allocation3], 10240  }
  0x52   :  { %2410 = vsyncadd [#allocation3], 4294957056 }
  0x53   :  { %2411 = dma.done.wait [#allocation6], 10256  }
  0x54   :  { %2412 = vsyncadd [#allocation6], 4294957040 }
  0x55   :  { %2413 = dma.done.wait [#allocation9], 2048  }
  0x56   :  { %2414 = vsyncadd [#allocation9], 4294965248  ;;  %vm131_vm0 = vcmask 195584   ;;  %s2949_s21 = sld [smem:[#allocation18_spill]]  ;;  %s2950_s6 = sld [smem:[#allocation19_spill]]  ;;  %v309_v6 = vld [vmem:[#allocation2 + $0x80] sm:$0xff] }
  0x57   :  { %v310_v7 = vld [vmem:[#allocation2 + $0x88] sm:$0xff]  ;;  %v293_v8 = vld [vmem:[#allocation2] sm:$0xff]  ;;  %v311_v11 = vld [vmem:[#allocation2 + $0x90] sm:$0xff]  ;;  %vm2426_vm1 = vmmov 0   ;;  %s2951_s9 = sld [smem:[#allocation21_spill]] }
  0x58   :  { %v2020_v9 = vpack.c.bf16 %v310_v7, %v309_v6  ;;  %v294_v10 = vld [vmem:[#allocation2 + $0x8] sm:$0xff]  ;;  %v312_v12 = vld [vmem:[#allocation2 + $0x98] sm:$0xff]  ;;  %v295_v16 = vld [vmem:[#allocation2 + $0x10] sm:$0xff] }
  0x59   :  { %v2022_v14 = vpack.c.bf16 %v294_v10, %v293_v8  ;;  %v2024_v15 = vpack.c.bf16 %v312_v12, %v311_v11  ;;  %v296_v17 = vld [vmem:[#allocation2 + $0x18] sm:$0xff]  ;;  %v313_v18 = vld [vmem:[#allocation2 + $0xa0] sm:$0xff]  ;;  %v314_v19 = vld [vmem:[#allocation2 + $0xa8] sm:$0xff] }
  0x5a   :  { %v2026_v22 = vpack.c.bf16 %v296_v17, %v295_v16  ;;  %v297_v23 = vld [vmem:[#allocation2 + $0x20] sm:$0xff]  ;;  %v342_v25 = vld [vmem:[#allocation2 + $0x188] sm:$0xff]  ;;  %v2028_v26 = vpack.c.bf16 %v314_v19, %v313_v18  ;;  %v315_v32 = vld [vmem:[#allocation2 + $0xb0] sm:$0xff] }
  0x5b   :  { %v341_v24 = vld [vmem:[#allocation2 + $0x180] sm:$0xff]  ;;  %v298_v27 = vld [vmem:[#allocation2 + $0x28] sm:$0xff]  ;;  %v316_v33 = vld [vmem:[#allocation2 + $0xb8] sm:$0xff] }
  0x5c   :  { %v2604_v0 = vld [vmem:[%s2949_s21] sm:$0xff]  ;;  %v2609_v1 = vld [vmem:[%s2949_s21 + $0x8] sm:$0xff]  ;;  %v2621_v4 = vld [vmem:[%s2949_s21 + $0x10] sm:$0xff]  ;;  %v2052_v28 = vpack.c.bf16 %v342_v25, %v341_v24  ;;  %v2030_v39 = vpack.c.bf16 %v298_v27, %v297_v23  ;;  %v2032_v44 = vpack.c.bf16 %v316_v33, %v315_v32 }
  0x5d   :  { %v2016_v2 = vpack.c.bf16 %v2609_v1, %v2604_v0  ;;  %v2616_v3 = vld [vmem:[%s2950_s6] sm:$0xff]  ;;  %v2628_v5 = vld [vmem:[%s2950_s6 + $0x8] sm:$0xff]  ;;  %v2634_v13 = vld [vmem:[%s2950_s6 + $0x10] sm:$0xff] }
  0x5e   :  { %1810 = vmatprep.mubr.msk.f32.mxu1 %vm131_vm0, %v2616_v3  ;;  %v2642_v20 = vld [vmem:[%s2950_s6 + $0x18] sm:$0xff]  ;;  %v2647_v21 = vld [vmem:[%s2950_s6 + $0x20] sm:$0xff]  ;;  %v326_v30 = vld [vmem:[#allocation2 + $0x108] sm:$0xff]  ;;  %2053 = vmatprep.subr.bf16.mxu0 %v2052_v28 }
  0x5f   :  { %2017 = vmatprep.subr.bf16.mxu1 %v2016_v2  ;;  %v325_v29 = vld [vmem:[#allocation2 + $0x100] sm:$0xff]  ;;  %v2654_v31 = vld [vmem:[%s2950_s6 + $0x28] sm:$0xff]  ;;  %v2661_v35 = vld [vmem:[%s2950_s6 + $0x30] sm:$0xff] }
  0x60   :  { %2019 = vmatpush3.bf16.msra.mxu1 %v2016_v2  ;;  %v2054_v34 = vpack.c.bf16 %v326_v30, %v325_v29  ;;  %v343_v36 = vld [vmem:[#allocation2 + $0x190] sm:$0xff]  ;;  %v344_v37 = vld [vmem:[#allocation2 + $0x198] sm:$0xff]  ;;  %v317_v45 = vld [vmem:[#allocation2 + $0xc0] sm:$0xff] }
  0x61   :  { %1808 = vmatprep.subr.mxu1 %v2621_v4  ;;  %v327_v38 = vld [vmem:[#allocation2 + $0x110] sm:$0xff]  ;;  %v300_v41 = vld [vmem:[#allocation2 + $0x38] sm:$0xff]  ;;  %v2056_v42 = vpack.c.bf16 %v344_v37, %v343_v36  ;;  %v318_v46 = vld [vmem:[#allocation2 + $0xc8] sm:$0xff] }
  0x62   :  { %v299_v40 = vld [vmem:[#allocation2 + $0x30] sm:$0xff]  ;;  %v328_v43 = vld [vmem:[#allocation2 + $0x118] sm:$0xff]  ;;  %2055 = vmatpush3.bf16.msra.mxu0 %v2054_v34  ;;  %v345_v48 = vld [vmem:[#allocation2 + $0x1a0] sm:$0xff]  ;;  %v2036_v58 = vpack.c.bf16 %v318_v46, %v317_v45 }
  0x63   :  { %v2058_v47 = vpack.c.bf16 %v328_v43, %v327_v38  ;;  %2057 = vmatprep.subr.bf16.mxu0 %v2056_v42  ;;  %v346_v49 = vld [vmem:[#allocation2 + $0x1a8] sm:$0xff]  ;;  %v329_v50 = vld [vmem:[#allocation2 + $0x120] sm:$0xff]  ;;  %v2670_v52 = vld [vmem:[%s2950_s6 + $0x38] sm:$0xff]  ;;  %v2034_v55 = vpack.c.bf16 %v300_v41, %v299_v40  ;;  %v2425_v43 = vmov 0.0|0.0  }
  0x64   :  { %1809 = vmatpush3.msra.mxu1 %v2621_v4  ;;  %v330_v51 = vld [vmem:[#allocation2 + $0x128] sm:$0xff]  ;;  %v2060_v53 = vpack.c.bf16 %v346_v49, %v345_v48  ;;  %v2677_v54 = vld [vmem:[%s2950_s6 + $0x40] sm:$0xff]  ;;  %v347_v56 = vld [vmem:[#allocation2 + $0x1b0] sm:$0xff] }
  0x65   :  { %1811 = vmatmul.mubr.msk.f32.vlgmr.msra.gmra.mrb[0].mxu1 %vm131_vm0, %v2628_v5  ;;  %2021 = vmatprep.subr.bf16.mxu1 %v2020_v9  ;;  %v348_v57 = vld [vmem:[#allocation2 + $0x1b8] sm:$0xff]  ;;  %v301_v59 = vld [vmem:[#allocation2 + $0x40] sm:$0xff]  ;;  %v302_v60 = vld [vmem:[#allocation2 + $0x48] sm:$0xff]  ;;  %v2062_v62 = vpack.c.bf16 %v330_v51, %v329_v50 }
  0x66   :  { %1813 = vmatprep.mubr.msk.f32.mxu1 %vm131_vm0, %v2634_v13  ;;  %2023 = vmatpush3.bf16.msra.mxu1 %v2022_v14  ;;  %v319_v61 = vld [vmem:[#allocation2 + $0xd0] sm:$0xff]  ;;  %v320_v63 = vld [vmem:[#allocation2 + $0xd8] sm:$0xff]  ;;  %v2064_v2 = vpack.c.bf16 %v348_v57, %v347_v56  ;;  %v349_v8 = vld [vmem:[#allocation2 + $0x1c0] sm:$0xff]  ;;  %v2038_v11 = vpack.c.bf16 %v302_v60, %v301_v59 }
  0x67   :  { %2025 = vmatprep.subr.bf16.mxu1 %v2024_v15  ;;  %2059 = vmatpush3.bf16.msra.mxu0 %v2058_v47  ;;  %v331_v6 = vld [vmem:[#allocation2 + $0x130] sm:$0xff]  ;;  %v332_v7 = vld [vmem:[#allocation2 + $0x138] sm:$0xff]  ;;  %v350_v9 = vld [vmem:[#allocation2 + $0x1c8] sm:$0xff]  ;;  %v2040_v14 = vpack.c.bf16 %v320_v63, %v319_v61 }
  0x68   :  { %2061 = vmatprep.subr.bf16.mxu0 %v2060_v53  ;;  %v2686_v10 = vld [vmem:[%s2950_s6 + $0x48] sm:$0xff]  ;;  %v2691_v12 = vld [vmem:[%s2950_s6 + $0x50] sm:$0xff]  ;;  %v304_v16 = vld [vmem:[#allocation2 + $0x58] sm:$0xff]  ;;  %v2066_v17 = vpack.c.bf16 %v332_v7, %v331_v6 }
  0x69   :  { %1814 = vmatmul.mubr.msk.f32.gmra.mrb[2].mxu1 %vm131_vm0, %v2642_v20  ;;  %v303_v15 = vld [vmem:[#allocation2 + $0x50] sm:$0xff]  ;;  %v321_v18 = vld [vmem:[#allocation2 + $0xe0] sm:$0xff]  ;;  %v322_v19 = vld [vmem:[#allocation2 + $0xe8] sm:$0xff] }
  0x6a   :  { %1816 = vmatprep.mubr.msk.f32.mxu1 %vm131_vm0, %v2647_v21  ;;  %2027 = vmatpush3.bf16.msra.mxu1 %v2026_v22  ;;  %v2068_v22 = vpack.c.bf16 %v350_v9, %v349_v8  ;;  %v2700_v23 = vld [vmem:[%s2950_s6 + $0x58] sm:$0xff]  ;;  %v2042_v24 = vpack.c.bf16 %v304_v16, %v303_v15  ;;  %v2044_v25 = vpack.c.bf16 %v322_v19, %v321_v18  ;;  %v306_v27 = vld [vmem:[#allocation2 + $0x68] sm:$0xff]  ;;  %v323_v28 = vld [vmem:[#allocation2 + $0xf0] sm:$0xff] }
  0x6b   :  { %2029 = vmatprep.subr.bf16.mxu1 %v2028_v26  ;;  %2063 = vmatpush3.bf16.msra.mxu0 %v2062_v62  ;;  %v305_v26 = vld [vmem:[#allocation2 + $0x60] sm:$0xff]  ;;  %v324_v29 = vld [vmem:[#allocation2 + $0xf8] sm:$0xff]  ;;  %v307_v33 = vld [vmem:[#allocation2 + $0x70] sm:$0xff] }
  0x6c   :  { %2065 = vmatprep.subr.bf16.mxu0 %v2064_v2  ;;  %v2046_v30 = vpack.c.bf16 %v306_v27, %v305_v26  ;;  %v2048_v32 = vpack.c.bf16 %v324_v29, %v323_v28  ;;  %v308_v34 = vld [vmem:[#allocation2 + $0x78] sm:$0xff]  ;;  %v333_v37 = vld [vmem:[#allocation2 + $0x140] sm:$0xff]  ;;  %v334_v38 = vld [vmem:[#allocation2 + $0x148] sm:$0xff]  ;;  %v2427_v26 = vmov 0.0  }
  0x6d   :  { %1817 = vmatmul.mubr.msk.f32.gmra.mrb[4].mxu1 %vm131_vm0, %v2654_v31  ;;  %v2050_v36 = vpack.c.bf16 %v308_v34, %v307_v33  ;;  %v351_v40 = vld [vmem:[#allocation2 + $0x1d0] sm:$0xff]  ;;  %v352_v41 = vld [vmem:[#allocation2 + $0x1d8] sm:$0xff]  ;;  %v353_v47 = vld [vmem:[#allocation2 + $0x1e0] sm:$0xff] }
  0x6e   :  { %1819 = vmatprep.mubr.msk.f32.mxu1 %vm131_vm0, %v2661_v35  ;;  %2031 = vmatpush3.bf16.msra.mxu1 %v2030_v39  ;;  %v2070_v39 = vpack.c.bf16 %v334_v38, %v333_v37  ;;  %v2072_v42 = vpack.c.bf16 %v352_v41, %v351_v40  ;;  %v336_v45 = vld [vmem:[#allocation2 + $0x158] sm:$0xff]  ;;  %v354_v48 = vld [vmem:[#allocation2 + $0x1e8] sm:$0xff]  ;;  %v337_v50 = vld [vmem:[#allocation2 + $0x160] sm:$0xff] }
  0x6f   :  { %2033 = vmatprep.subr.bf16.mxu1 %v2032_v44  ;;  %2067 = vmatpush3.bf16.msra.mxu0 %v2066_v17  ;;  %v335_v44 = vld [vmem:[#allocation2 + $0x150] sm:$0xff]  ;;  %v2076_v49 = vpack.c.bf16 %v354_v48, %v353_v47  ;;  %v338_v51 = vld [vmem:[#allocation2 + $0x168] sm:$0xff]  ;;  %v356_v56 = vld [vmem:[#allocation2 + $0x1f8] sm:$0xff] }
  0x70   :  { %2069 = vmatprep.subr.bf16.mxu0 %v2068_v22  ;;  %v2074_v46 = vpack.c.bf16 %v336_v45, %v335_v44  ;;  %v2078_v53 = vpack.c.bf16 %v338_v51, %v337_v50  ;;  %v340_v59 = vld [vmem:[#allocation2 + $0x178] sm:$0xff]  ;;  %v357_v61 = vld [vmem:[#allocation2 + $0x200] sm:$0xff]  ;;  %v358_v62 = vld [vmem:[#allocation2 + $0x208] sm:$0xff] }
  0x71   :  { %1820 = vmatmul.mubr.msk.f32.gmra.mrb[6].mxu1 %vm131_vm0, %v2670_v52  ;;  %v2085_v2 = vpack.c.bf16 %v358_v62, %v357_v61  ;;  %v359_v7 = vld [vmem:[#allocation2 + $0x210] sm:$0xff]  ;;  %v360_v8 = vld [vmem:[#allocation2 + $0x218] sm:$0xff]  ;;  %v361_v15 = vld [vmem:[#allocation2 + $0x220] sm:$0xff] }
  0x72   :  { %1822 = vmatprep.mubr.msk.f32.mxu1 %vm131_vm0, %v2677_v54  ;;  %2035 = vmatpush3.bf16.msra.mxu1 %v2034_v55  ;;  %v355_v55 = vld [vmem:[#allocation2 + $0x1f0] sm:$0xff]  ;;  %v2088_v9 = vpack.c.bf16 %v360_v8, %v359_v7  ;;  %v362_v16 = vld [vmem:[#allocation2 + $0x228] sm:$0xff]  ;;  %v365_v27 = vld [vmem:[#allocation2 + $0x240] sm:$0xff] }
  0x73   :  { %2037 = vmatprep.subr.bf16.mxu1 %v2036_v58  ;;  %2071 = vmatpush3.bf16.msra.mxu0 %v2070_v39  ;;  %v2080_v57 = vpack.c.bf16 %v356_v56, %v355_v55  ;;  %v339_v58 = vld [vmem:[#allocation2 + $0x170] sm:$0xff]  ;;  %v2091_v18 = vpack.c.bf16 %v362_v16, %v361_v15  ;;  %v366_v28 = vld [vmem:[#allocation2 + $0x248] sm:$0xff]  ;;  %v368_v33 = vld [vmem:[#allocation2 + $0x258] sm:$0xff] }
  0x74   :  { %2073 = vmatprep.subr.bf16.mxu0 %v2072_v42  ;;  %v2082_v60 = vpack.c.bf16 %v340_v59, %v339_v58  ;;  %v363_v22 = vld [vmem:[#allocation2 + $0x230] sm:$0xff]  ;;  %v2097_v29 = vpack.c.bf16 %v366_v28, %v365_v27  ;;  %v369_v37 = vld [vmem:[#allocation2 + $0x260] sm:$0xff]  ;;  %v370_v38 = vld [vmem:[#allocation2 + $0x268] sm:$0xff] }
  0x75   :  { %1823 = vmatmul.mubr.msk.f32.gmra.mrb[8].mxu1 %vm131_vm0, %v2686_v10  ;;  %v2103_v40 = vpack.c.bf16 %v370_v38, %v369_v37  ;;  %v371_v41 = vld [vmem:[#allocation2 + $0x270] sm:$0xff]  ;;  %v372_v42 = vld [vmem:[#allocation2 + $0x278] sm:$0xff]  ;;  %v1512_v55 = vld [vmem:[%s2951_s9] ss:$0 sm:$0xff] }
  0x76   :  { %1825 = vmatprep.mubr.msk.f32.mxu1 %vm131_vm0, %v2691_v12  ;;  %2039 = vmatpush3.bf16.msra.mxu1 %v2038_v11  ;;  %v2106_v44 = vpack.c.bf16 %v372_v42, %v371_v41 }
  0x77   :  { %2041 = vmatprep.subr.bf16.mxu1 %v2040_v14  ;;  %2075 = vmatpush3.bf16.msra.mxu0 %v2074_v46 }
  0x78   :  { %2077 = vmatprep.subr.bf16.mxu0 %v2076_v49 }
  0x79   :  { %1826 = vmatmul.mubr.msk.f32.gmra.mrb[10].mxu1 %vm131_vm0, %v2700_v23 }
  0x7a   :  { %2043 = vmatpush3.bf16.msra.mxu1 %v2042_v24 }
  0x7b   :  { %2045 = vmatprep.subr.bf16.mxu1 %v2044_v25  ;;  %2079 = vmatpush3.bf16.msra.mxu0 %v2078_v53 }
  0x7c   :  { %2081 = vmatprep.subr.bf16.mxu0 %v2080_v57 }
  0x7e   :  { %2047 = vmatpush3.bf16.msra.mxu1 %v2046_v30 }
  0x7f   :  { %2049 = vmatprep.subr.bf16.mxu1 %v2048_v32  ;;  %2083 = vmatpush3.bf16.msra.mxu0 %v2082_v60  ;;  %v367_v32 = vld [vmem:[#allocation2 + $0x250] sm:$0xff] }
  0x80   :  { %v2100_v34 = vpack.c.bf16 %v368_v33, %v367_v32 }
  0x82   :  { %2051 = vmatpush3.bf16.msra.mxu1 %v2050_v36 }
  0x83   :  { %2084 = vmatprep.subr.bf16.mxu1 %v2425_v43 }
 0x138   :  { %v1812_v63 = vpop.f32.mrb[0].mxu1 }
 0x139   :  { %v234_v6 = vpop.f32.mrb[1].mxu1 }
 0x13a   :  { %444 = vmatprep.mubr.f32.mxu1 %v234_v6 }
 0x13b   :  { %445 = vmatmul.mubr.f32.vlgmr.msra.gmra.mrb[12].mxu1 %v2604_v0  ;;  %v364_v0 = vld [vmem:[#allocation2 + $0x238] sm:$0xff] }
 0x13c   :  { %2086 = vmatpush3.bf16.msra.mxu1 %v2085_v2  ;;  %449 = vmatprep.mubr.f32.mxu1 %v1812_v63  ;;  %v1815_v11 = vpop.f32.mrb[2].mxu1  ;;  %v2094_v25 = vpack.c.bf16 %v364_v0, %v363_v22 }
 0x13d   :  { %2087 = vmatprep.subr.bf16.mxu1 %v2425_v43  ;;  %v244_v14 = vpop.f32.mrb[3].mxu1 }
 0x13f   :  { %450 = vmatmul.mubr.f32.gmra.mrb[14].mxu1 %v2609_v1 }
 0x140   :  { %2089 = vmatpush3.bf16.msra.mxu1 %v2088_v9  ;;  %v1818_v17 = vpop.f32.mrb[4].mxu1  ;;  %454 = vmatprep.mubr.f32.mxu1 %v244_v14 }
 0x141   :  { %2090 = vmatprep.subr.bf16.mxu1 %v2425_v43  ;;  %v254_v19 = vpop.f32.mrb[5].mxu1 }
 0x143   :  { %455 = vmatmul.mubr.f32.gmra.mrb[16].mxu1 %v2621_v4 }
 0x144   :  { %2092 = vmatpush3.bf16.msra.mxu1 %v2091_v18  ;;  %v1821_v24 = vpop.f32.mrb[6].mxu1  ;;  %1860 = vmatprep.mubr.msk.f32.mxu1 %vm2426_vm1, %v2427_v26 }
 0x145   :  { %v264_v1 = vpop.f32.mrb[7].mxu1  ;;  %2093 = vmatprep.subr.bf16.mxu1 %v2425_v43 }
 0x146   :  { %524 = vmatprep.mubr.f32.mxu0 %v264_v1 }
 0x147   :  { %525 = vmatmul.mubr.f32.vlgmr.msra.gmra.mrb[0].mxu0 %v1815_v11 }
 0x148   :  { %2095 = vmatpush3.bf16.msra.mxu1 %v2094_v25  ;;  %529 = vmatprep.mubr.f32.mxu0 %v1821_v24  ;;  %v1824_v30 = vpop.f32.mrb[8].mxu1 }
 0x149   :  { %2096 = vmatprep.subr.bf16.mxu1 %v2425_v43  ;;  %v274_v4 = vpop.f32.mrb[9].mxu1 }
 0x14b   :  { %530 = vmatmul.mubr.f32.gmra.mrb[2].mxu0 %v254_v19 }
 0x14c   :  { %2098 = vmatpush3.bf16.msra.mxu1 %v2097_v29  ;;  %534 = vmatprep.mubr.f32.mxu0 %v274_v4  ;;  %v1827_v36 = vpop.f32.mrb[10].mxu1  ;;  %v634_v29 = vlaneseq }
 0x14d   :  { %2099 = vmatprep.subr.bf16.mxu1 %v2425_v43  ;;  %v284_v39 = vpop.f32.mrb[11].mxu1 }
 0x14f   :  { %535 = vmatmul.mubr.f32.gmra.mrb[4].mxu0 %v1818_v17 }
 0x150   :  { %2101 = vmatpush3.bf16.msra.mxu1 %v2100_v34  ;;  %1875 = vmatprep.mubr.msk.f32.mxu0 %vm131_vm0, %v2616_v3 }
 0x151   :  { %2102 = vmatprep.subr.bf16.mxu1 %v2425_v43 }
 0x154   :  { %2104 = vmatpush3.bf16.msra.mxu1 %v2103_v40 }
 0x155   :  { %2105 = vmatprep.subr.bf16.mxu1 %v2425_v43 }
 0x158   :  { %2107 = vmatpush3.bf16.msra.mxu1 %v2106_v44 }
 0x15b   :  { %1861 = vmatmul.mubr.f32.vlgmr.msra.gmra.mrb[18].mxu1 %v1824_v30  ;;  %v2726_v30 = vand.u32 127, %v634_v29 }
 0x15c   :  { %1863 = vmatprep.mubr.msk.f32.mxu1 %vm2426_vm1, %v2427_v26 }
 0x15d   :  { %vm636_vm2 = vcmp.lt.s32.totalorder %v2726_v30, 32  ;;  %vm1313_vm3 = vcmp.lt.s32.totalorder %v2726_v30, 16  ;;  %v1367_v30 = vld [vmem:[#allocation8 + $0x40] sm:$0xff] }
 0x15f   :  { %1864 = vmatmul.mubr.f32.gmra.mrb[20].mxu1 %v284_v39 }
 0x160   :  { %1866 = vmatprep.mubr.msk.f32.mxu1 %vm2426_vm1, %v2427_v26 }
 0x163   :  { %1867 = vmatmul.mubr.f32.gmra.mrb[22].mxu1 %v1827_v36 }
 0x20e   :  { %v1581_v45 = vpop.f32.mrb[12].mxu1 }
 0x20f   :  { %v1582_v3 = vpop.f32.mrb[13].mxu1 }
 0x210   :  { %v1583_v46 = vadd.f32 %v1582_v3, %v1581_v45 }
 0x212   :  { %v1584_v47 = vpop.f32.mrb[14].mxu1  ;;  %v447_v58 = vadd.f32 %v1583_v46, %v1512_v55 }
 0x213   :  { %v1585_v48 = vpop.f32.mrb[15].mxu1 }
 0x214   :  { %v1586_v49 = vadd.f32 %v1585_v48, %v1584_v47  ;;  %v855_v47 = vld [vmem:[#allocation5 + $0x180] sm:$0xff]  ;;  %v856_v48 = vld [vmem:[#allocation5 + $0x188] sm:$0xff] }
 0x216   :  { %v1587_v50 = vpop.f32.mrb[16].mxu1  ;;  %v452_v60 = vadd.f32 %v1586_v49, %v1512_v55  ;;  %v2144_v49 = vpack.c.bf16 %v856_v48, %v855_v47 }
 0x217   :  { %v1588_v51 = vpop.f32.mrb[17].mxu1 }
 0x218   :  { %v1589_v53 = vadd.f32 %v1588_v51, %v1587_v50  ;;  %v839_v50 = vld [vmem:[#allocation5 + $0x100] sm:$0xff]  ;;  %v840_v51 = vld [vmem:[#allocation5 + $0x108] sm:$0xff]  ;;  %2145 = vmatprep.subr.bf16.mxu1 %v2144_v49 }
 0x219   :  { %v823_v49 = vld [vmem:[#allocation5 + $0x80] sm:$0xff] }
 0x21a   :  { %v1622_v56 = vpop.f32.mrb[0].mxu0  ;;  %v457_v6 = vadd.f32 %v1589_v53, %v1512_v55  ;;  %v2146_v53 = vpack.c.bf16 %v840_v51, %v839_v50  ;;  %v857_v55 = vld [vmem:[#allocation5 + $0x190] sm:$0xff]  ;;  %v824_v50 = vld [vmem:[#allocation5 + $0x88] sm:$0xff]  ;;  %v807_v51 = vld [vmem:[#allocation5] sm:$0xff] }
 0x21b   :  { %v1623_v57 = vpop.f32.mrb[1].mxu0 }
 0x21c   :  { %v1624_v59 = vadd.f32 %v1623_v57, %v1622_v56  ;;  %v858_v56 = vld [vmem:[#allocation5 + $0x198] sm:$0xff]  ;;  %v841_v57 = vld [vmem:[#allocation5 + $0x110] sm:$0xff]  ;;  %2147 = vmatpush3.bf16.msra.mxu1 %v2146_v53  ;;  %v808_v53 = vld [vmem:[#allocation5 + $0x8] sm:$0xff] }
 0x21e   :  { %v1625_v61 = vpop.f32.mrb[2].mxu0  ;;  %v527_v62 = vadd.f32 %v1624_v59, %v447_v58  ;;  %v2148_v58 = vpack.c.bf16 %v858_v56, %v857_v55  ;;  %v842_v59 = vld [vmem:[#allocation5 + $0x118] sm:$0xff]  ;;  %v825_v55 = vld [vmem:[#allocation5 + $0x90] sm:$0xff] }
 0x21f   :  { %v1626_v63 = vpop.f32.mrb[3].mxu0  ;;  %v826_v56 = vld [vmem:[#allocation5 + $0x98] sm:$0xff] }
 0x220   :  { %v1627_v2 = vadd.f32 %v1626_v63, %v1625_v61  ;;  %v859_v61 = vld [vmem:[#allocation5 + $0x1a0] sm:$0xff]  ;;  %2149 = vmatprep.subr.bf16.mxu1 %v2148_v58  ;;  %v2114_v58 = vpack.c.bf16 %v808_v53, %v807_v51  ;;  %v852_v53 = vld [vmem:[#allocation5 + $0x168] sm:$0xff] }
 0x221   :  { %v843_v63 = vld [vmem:[#allocation5 + $0x120] sm:$0xff] }
 0x222   :  { %v1628_v7 = vpop.f32.mrb[4].mxu0  ;;  %v532_v8 = vadd.f32 %v1627_v2, %v452_v60  ;;  %v2150_v60 = vpack.c.bf16 %v842_v59, %v841_v57  ;;  %v844_v2 = vld [vmem:[#allocation5 + $0x128] sm:$0xff]  ;;  %v2112_v57 = vpack.c.bf16 %v824_v50, %v823_v49  ;;  %v2116_v59 = vpack.c.bf16 %v826_v56, %v825_v55  ;;  %v851_v51 = vld [vmem:[#allocation5 + $0x160] sm:$0xff]  ;;  %v869_v56 = vld [vmem:[#allocation5 + $0x1f0] sm:$0xff] }
 0x223   :  { %v1629_v9 = vpop.f32.mrb[5].mxu0  ;;  %v868_v49 = vld [vmem:[#allocation5 + $0x1e8] sm:$0xff]  ;;  %v2170_v55 = vpack.c.bf16 %v852_v53, %v851_v51 }
 0x224   :  { %v1630_v11 = vadd.f32 %v1629_v9, %v1628_v7  ;;  %2151 = vmatpush3.bf16.msra.mxu1 %v2150_v60  ;;  %v2154_v7 = vpack.c.bf16 %v844_v2, %v843_v63  ;;  %v862_v9 = vld [vmem:[#allocation5 + $0x1b8] sm:$0xff] }
 0x225   :  { %v810_v60 = vld [vmem:[#allocation5 + $0x18] sm:$0xff] }
 0x226   :  { %v537_v14 = vadd.f32 %v1630_v11, %v457_v6 }
 0x22e   :  { %v606_v15 = vpop.f32.mrb[18].mxu1 }
 0x22f   :  { %v607_v16 = vadd.f32 %v606_v15, %v527_v62  ;;  %v1862_v17 = vpop.f32.mrb[19].mxu1  ;;  %v860_v62 = vld [vmem:[#allocation5 + $0x1a8] sm:$0xff]  ;;  %v846_v15 = vld [vmem:[#allocation5 + $0x138] sm:$0xff] }
 0x230   :  { %v2152_v6 = vpack.c.bf16 %v860_v62, %v859_v61  ;;  %v864_v17 = vld [vmem:[#allocation5 + $0x1c8] sm:$0xff]  ;;  %v827_v61 = vld [vmem:[#allocation5 + $0xa0] sm:$0xff] }
 0x231   :  { %v620_v18 = vmax.f32 %v607_v16, 0.0  ;;  %v863_v16 = vld [vmem:[#allocation5 + $0x1c0] sm:$0xff]  ;;  %v828_v62 = vld [vmem:[#allocation5 + $0xa8] sm:$0xff] }
 0x232   :  { %v611_v19 = vpop.f32.mrb[20].mxu1  ;;  %2153 = vmatprep.subr.bf16.mxu1 %v2152_v6  ;;  %v2120_v2 = vpack.c.bf16 %v828_v62, %v827_v61  ;;  %v811_v6 = vld [vmem:[#allocation5 + $0x20] sm:$0xff]  ;;  %v872_v62 = vld [vmem:[#allocation5 + $0x208] sm:$0xff] }
 0x233   :  { %v612_v22 = vadd.f32 %v611_v19, %v532_v8  ;;  %v1865_v0 = vpop.f32.mrb[21].mxu1  ;;  %625 = vadd.xlane.f32.xlu0 %v620_v18  ;;  %v861_v8 = vld [vmem:[#allocation5 + $0x1b0] sm:$0xff]  ;;  %2155 = vmatpush3.bf16.msra.mxu1 %v2154_v7  ;;  %v2160_v19 = vpack.c.bf16 %v864_v17, %v863_v16  ;;  %v812_v7 = vld [vmem:[#allocation5 + $0x28] sm:$0xff]  ;;  %v871_v61 = vld [vmem:[#allocation5 + $0x200] sm:$0xff] }
 0x234   :  { %v2156_v11 = vpack.c.bf16 %v862_v9, %v861_v8  ;;  %v829_v8 = vld [vmem:[#allocation5 + $0xb0] sm:$0xff]  ;;  %v830_v9 = vld [vmem:[#allocation5 + $0xb8] sm:$0xff]  ;;  %v832_v16 = vld [vmem:[#allocation5 + $0xc8] sm:$0xff] }
 0x235   :  { %v621_v24 = vmax.f32 %v612_v22, 0.0 }
 0x236   :  { %v616_v25 = vpop.f32.mrb[22].mxu1  ;;  %2157 = vmatprep.subr.bf16.mxu1 %v2156_v11  ;;  %v2124_v11 = vpack.c.bf16 %v830_v9, %v829_v8  ;;  %v874_v8 = vld [vmem:[#allocation5 + $0x218] sm:$0xff] }
 0x237   :  { %v617_v1 = vadd.f32 %v616_v25, %v537_v14  ;;  %v1868_v27 = vpop.f32.mrb[23].mxu1  ;;  %627 = vadd.xlane.f32.xlu0 %v621_v24  ;;  %v845_v14 = vld [vmem:[#allocation5 + $0x130] sm:$0xff] }
 0x239   :  { %v622_v28 = vmax.f32 %v617_v1, 0.0 }
 0x23b   :  { %629 = vadd.xlane.f32.xlu1 %v622_v28 }
 0x2c0   :  { %v626_v4 = vpop.xlane.xlu0 %625 }
 0x2c1   :  { %v631_v32 = vmul.f32 0.03125, %v626_v4 }
 0x2c3   :  { %v637_v33 = vsub.f32 %v620_v18, %v631_v32  ;;  %v2158_v18 = vpack.c.bf16 %v846_v15, %v845_v14  ;;  %v813_v14 = vld [vmem:[#allocation5 + $0x30] sm:$0xff]  ;;  %v831_v15 = vld [vmem:[#allocation5 + $0xc0] sm:$0xff] }
 0x2c4   :  { %v628_v34 = vpop.xlane.xlu0 %627 }
 0x2c5   :  { %v632_v36 = vmul.f32 0.03125, %v628_v34  ;;  %v640_v37 = vsel %vm636_vm2, %v637_v33, 0.0  ;;  %2159 = vmatpush3.bf16.msra.mxu1 %v2158_v18  ;;  %v1513_v34 = vld [vmem:[%s2925_s4] ss:$0 sm:$0xff] }
 0x2c6   :  { %v643_v38 = vmul.f32 %v640_v37, %v640_v37  ;;  %2161 = vmatprep.subr.bf16.mxu1 %v2160_v19  ;;  %v815_v18 = vld [vmem:[#allocation5 + $0x40] sm:$0xff]  ;;  %v833_v19 = vld [vmem:[#allocation5 + $0xd0] sm:$0xff] }
 0x2c7   :  { %v638_v39 = vsub.f32 %v621_v24, %v632_v36 }
 0x2c8   :  { %v630_v40 = vpop.xlane.xlu1 %629  ;;  %646 = vadd.xlane.f32.xlu1 %v643_v38 }
 0x2c9   :  { %v633_v41 = vmul.f32 0.03125, %v630_v40  ;;  %v641_v42 = vsel %vm636_vm2, %v638_v39, 0.0  ;;  %v1514_v40 = vld [vmem:[%s2926_s5] ss:$0 sm:$0xff] }
 0x2ca   :  { %v644_v44 = vmul.f32 %v641_v42, %v641_v42 }
 0x2cb   :  { %v639_v45 = vsub.f32 %v622_v28, %v633_v41 }
 0x2cc   :  { %648 = vadd.xlane.f32.xlu0 %v644_v44 }
 0x2cd   :  { %v642_v3 = vsel %vm636_vm2, %v639_v45, 0.0 }
 0x2ce   :  { %v645_v46 = vmul.f32 %v642_v3, %v642_v3 }
 0x2d0   :  { %650 = vadd.xlane.f32.xlu1 %v645_v46 }
 0x355   :  { %v647_v22 = vpop.xlane.xlu1 %646 }
 0x356   :  { %v652_v0 = vmul.f32 0.03125, %v647_v22  ;;  %v834_v22 = vld [vmem:[#allocation5 + $0xd8] sm:$0xff] }
 0x358   :  { %v655_v24 = vadd.f32 1e-05, %v652_v0 }
 0x359   :  { %v649_v25 = vpop.xlane.xlu0 %648 }
 0x35a   :  { %2259 = vrsqrt.f32 %v655_v24  ;;  %v653_v1 = vmul.f32 0.03125, %v649_v25  ;;  %v817_v24 = vld [vmem:[#allocation5 + $0x50] sm:$0xff]  ;;  %v835_v25 = vld [vmem:[#allocation5 + $0xe0] sm:$0xff] }
 0x35c   :  { %v656_v27 = vadd.f32 1e-05, %v653_v1  ;;  %v836_v1 = vld [vmem:[#allocation5 + $0xe8] sm:$0xff] }
 0x35d   :  { %v651_v28 = vpop.xlane.xlu1 %650 }
 0x35e   :  { %2261 = vrsqrt.f32 %v656_v27  ;;  %v654_v29 = vmul.f32 0.03125, %v651_v28  ;;  %v819_v28 = vld [vmem:[#allocation5 + $0x60] sm:$0xff] }
 0x360   :  { %v657_v4 = vadd.f32 1e-05, %v654_v29  ;;  %v837_v29 = vld [vmem:[#allocation5 + $0xf0] sm:$0xff] }
 0x362   :  { %2263 = vrsqrt.f32 %v657_v4  ;;  %v838_v4 = vld [vmem:[#allocation5 + $0xf8] sm:$0xff] }
 0x364   :  { %v2260_v32 = vpop.eup %2259 }
 0x365   :  { %v661_v33 = vmul.f32 %v2260_v32, %v640_v37 }
 0x367   :  { %v670_v39 = vmul.f32 %v1513_v34, %v661_v33  ;;  %v2140_v33 = vpack.c.bf16 %v838_v4, %v837_v29  ;;  %v885_v29 = vld [vmem:[#allocation5 + $0x270] sm:$0xff]  ;;  %v886_v4 = vld [vmem:[#allocation5 + $0x278] sm:$0xff] }
 0x368   :  { %v2262_v36 = vpop.eup %2261 }
 0x369   :  { %v662_v38 = vmul.f32 %v2262_v36, %v641_v42  ;;  %v2741_v45 = vadd.f32 %v1514_v40, %v670_v39 }
 0x36b   :  { %v671_v41 = vmul.f32 %v1513_v34, %v662_v38  ;;  %v848_v38 = vld [vmem:[#allocation5 + $0x148] sm:$0xff] }
 0x36c   :  { %v2264_v44 = vpop.eup %2263 }
 0x36d   :  { %v2743_v46 = vadd.f32 %v1514_v40, %v671_v41  ;;  %v663_v47 = vmul.f32 %v2264_v44, %v642_v3  ;;  %v809_v3 = vld [vmem:[#allocation5 + $0x10] sm:$0xff]  ;;  %v866_v41 = vld [vmem:[#allocation5 + $0x1d8] sm:$0xff] }
 0x36e   :  { %v2118_v63 = vpack.c.bf16 %v810_v60, %v809_v3  ;;  %v854_v3 = vld [vmem:[#allocation5 + $0x178] sm:$0xff] }
 0x36f   :  { %v2108_v37 = vpack.c.bf16 %v2743_v46, %v2741_v45  ;;  %v672_v48 = vmul.f32 %v1513_v34, %v663_v47  ;;  %v821_v34 = vld [vmem:[#allocation5 + $0x70] sm:$0xff]  ;;  %v850_v47 = vld [vmem:[#allocation5 + $0x158] sm:$0xff] }
 0x371   :  { %2109 = vmatprep.subr.bf16.mxu0 %v2108_v37  ;;  %v2747_v42 = vadd.f32 %v1514_v40, %v672_v48  ;;  %v865_v40 = vld [vmem:[#allocation5 + $0x1d0] sm:$0xff]  ;;  %v867_v48 = vld [vmem:[#allocation5 + $0x1e0] sm:$0xff] }
 0x372   :  { %2111 = vmatpush3.bf16.msra.mxu0 %v2108_v37  ;;  %v2164_v44 = vpack.c.bf16 %v866_v41, %v865_v40  ;;  %v2168_v50 = vpack.c.bf16 %v868_v49, %v867_v48 }
 0x373   :  { %1873 = vmatprep.subr.mxu0 %v2747_v42 }
 0x376   :  { %1874 = vmatpush3.msra.mxu0 %v2747_v42 }
 0x377   :  { %1876 = vmatmul.mubr.msk.f32.vlgmr.msra.gmra.mrb[6].mxu0 %vm131_vm0, %v2628_v5  ;;  %2113 = vmatprep.subr.bf16.mxu0 %v2112_v57  ;;  %v2122_v5 = vpack.c.bf16 %v812_v7, %v811_v6  ;;  %v870_v57 = vld [vmem:[#allocation5 + $0x1f8] sm:$0xff]  ;;  %v873_v7 = vld [vmem:[#allocation5 + $0x210] sm:$0xff] }
 0x378   :  { %1878 = vmatprep.mubr.msk.f32.mxu0 %vm131_vm0, %v2634_v13  ;;  %2115 = vmatpush3.bf16.msra.mxu0 %v2114_v58  ;;  %v814_v13 = vld [vmem:[#allocation5 + $0x38] sm:$0xff]  ;;  %v2172_v58 = vpack.c.bf16 %v870_v57, %v869_v56  ;;  %v2180_v9 = vpack.c.bf16 %v874_v8, %v873_v7 }
 0x379   :  { %2117 = vmatprep.subr.bf16.mxu0 %v2116_v59  ;;  %v2126_v17 = vpack.c.bf16 %v814_v13, %v813_v14  ;;  %v853_v59 = vld [vmem:[#allocation5 + $0x170] sm:$0xff]  ;;  %v875_v14 = vld [vmem:[#allocation5 + $0x220] sm:$0xff]  ;;  %v876_v13 = vld [vmem:[#allocation5 + $0x228] sm:$0xff] }
 0x37a   :  { %v2174_v60 = vpack.c.bf16 %v854_v3, %v853_v59 }
 0x37b   :  { %1879 = vmatmul.mubr.msk.f32.gmra.mrb[8].mxu0 %vm131_vm0, %v2642_v20  ;;  %v2128_v20 = vpack.c.bf16 %v832_v16, %v831_v15  ;;  %v2183_v16 = vpack.c.bf16 %v876_v13, %v875_v14 }
 0x37c   :  { %1881 = vmatprep.mubr.msk.f32.mxu0 %vm131_vm0, %v2647_v21  ;;  %2119 = vmatpush3.bf16.msra.mxu0 %v2118_v63  ;;  %v816_v21 = vld [vmem:[#allocation5 + $0x48] sm:$0xff] }
 0x37d   :  { %2121 = vmatprep.subr.bf16.mxu0 %v2120_v2  ;;  %v2130_v0 = vpack.c.bf16 %v816_v21, %v815_v18  ;;  %v2177_v2 = vpack.c.bf16 %v872_v62, %v871_v61 }
 0x37f   :  { %1882 = vmatmul.mubr.msk.f32.gmra.mrb[10].mxu0 %vm131_vm0, %v2654_v31  ;;  %v2132_v31 = vpack.c.bf16 %v834_v22, %v833_v19  ;;  %v880_v22 = vld [vmem:[#allocation5 + $0x248] sm:$0xff] }
 0x380   :  { %1884 = vmatprep.mubr.msk.f32.mxu0 %vm131_vm0, %v2661_v35  ;;  %2123 = vmatpush3.bf16.msra.mxu0 %v2122_v5  ;;  %v818_v35 = vld [vmem:[#allocation5 + $0x58] sm:$0xff] }
 0x381   :  { %2125 = vmatprep.subr.bf16.mxu0 %v2124_v11  ;;  %v2134_v27 = vpack.c.bf16 %v818_v35, %v817_v24  ;;  %v881_v24 = vld [vmem:[#allocation5 + $0x250] sm:$0xff]  ;;  %v882_v35 = vld [vmem:[#allocation5 + $0x258] sm:$0xff] }
 0x383   :  { %1885 = vmatmul.mubr.msk.f32.gmra.mrb[12].mxu0 %vm131_vm0, %v2670_v52  ;;  %v2136_v52 = vpack.c.bf16 %v836_v1, %v835_v25  ;;  %v2192_v25 = vpack.c.bf16 %v882_v35, %v881_v24 }
 0x384   :  { %1887 = vmatprep.mubr.msk.f32.mxu0 %vm131_vm0, %v2677_v54  ;;  %2127 = vmatpush3.bf16.msra.mxu0 %v2126_v17  ;;  %v820_v54 = vld [vmem:[#allocation5 + $0x68] sm:$0xff] }
 0x385   :  { %2129 = vmatprep.subr.bf16.mxu0 %v2128_v20  ;;  %v2138_v32 = vpack.c.bf16 %v820_v54, %v819_v28  ;;  %v877_v20 = vld [vmem:[#allocation5 + $0x230] sm:$0xff] }
 0x387   :  { %1888 = vmatmul.mubr.msk.f32.gmra.mrb[14].mxu0 %vm131_vm0, %v2686_v10  ;;  %v822_v10 = vld [vmem:[#allocation5 + $0x78] sm:$0xff] }
 0x388   :  { %1890 = vmatprep.mubr.msk.f32.mxu0 %vm131_vm0, %v2691_v12  ;;  %2131 = vmatpush3.bf16.msra.mxu0 %v2130_v0  ;;  %v2142_v36 = vpack.c.bf16 %v822_v10, %v821_v34  ;;  %v847_v12 = vld [vmem:[#allocation5 + $0x140] sm:$0xff] }
 0x389   :  { %2133 = vmatprep.subr.bf16.mxu0 %v2132_v31  ;;  %v2162_v39 = vpack.c.bf16 %v848_v38, %v847_v12 }
 0x38b   :  { %1891 = vmatmul.mubr.msk.f32.gmra.mrb[16].mxu0 %vm131_vm0, %v2700_v23  ;;  %2163 = vmatpush3.bf16.msra.mxu1 %v2162_v39  ;;  %v849_v23 = vld [vmem:[#allocation5 + $0x150] sm:$0xff] }
 0x38c   :  { %2135 = vmatpush3.bf16.msra.mxu0 %v2134_v27  ;;  %2165 = vmatprep.subr.bf16.mxu1 %v2164_v44  ;;  %v2166_v37 = vpack.c.bf16 %v850_v47, %v849_v23  ;;  %v883_v27 = vld [vmem:[#allocation5 + $0x260] sm:$0xff] }
 0x38d   :  { %2137 = vmatprep.subr.bf16.mxu0 %v2136_v52  ;;  %v884_v52 = vld [vmem:[#allocation5 + $0x268] sm:$0xff]  ;;  %v1527_v44 = vld [vmem:[%s2928_s7] ss:$0 sm:$0xff] }
 0x38e   :  { %v2195_v54 = vpack.c.bf16 %v884_v52, %v883_v27 }
 0x38f   :  { %2167 = vmatpush3.bf16.msra.mxu1 %v2166_v37 }
 0x390   :  { %2139 = vmatpush3.bf16.msra.mxu0 %v2138_v32  ;;  %2169 = vmatprep.subr.bf16.mxu1 %v2168_v50  ;;  %v2198_v32 = vpack.c.bf16 %v886_v4, %v885_v29 }
 0x391   :  { %2141 = vmatprep.subr.bf16.mxu0 %v2140_v33 }
 0x393   :  { %2171 = vmatpush3.bf16.msra.mxu1 %v2170_v55 }
 0x394   :  { %2143 = vmatpush3.bf16.msra.mxu0 %v2142_v36  ;;  %2173 = vmatprep.subr.bf16.mxu1 %v2172_v58 }
 0x395   :  { %2176 = vmatprep.subr.bf16.mxu0 %v2425_v43 }
 0x397   :  { %2175 = vmatpush3.bf16.msra.mxu1 %v2174_v60 }
 0x398   :  { %2200 = vmatprep.subr.bf16.mxu1 %v2425_v43 }
 0x44a   :  { %v1877_v63 = vpop.f32.mrb[6].mxu0 }
 0x44b   :  { %v748_v6 = vpop.f32.mrb[7].mxu0 }
 0x44c   :  { %958 = vmatprep.mubr.f32.mxu0 %v748_v6 }
 0x44d   :  { %959 = vmatmul.mubr.f32.vlgmr.msra.gmra.mrb[18].mxu0 %v2741_v45  ;;  %v878_v45 = vld [vmem:[#allocation5 + $0x238] sm:$0xff] }
 0x44e   :  { %2178 = vmatpush3.bf16.msra.mxu0 %v2177_v2  ;;  %963 = vmatprep.mubr.f32.mxu0 %v1877_v63  ;;  %v1880_v5 = vpop.f32.mrb[8].mxu0  ;;  %v2186_v21 = vpack.c.bf16 %v878_v45, %v877_v20  ;;  %v1199_v45 = vld [vmem:[%s2931_s10 + $0x18] sm:$0xff] }
 0x44f   :  { %2179 = vmatprep.subr.bf16.mxu0 %v2425_v43  ;;  %v758_v11 = vpop.f32.mrb[9].mxu0 }
 0x451   :  { %964 = vmatmul.mubr.f32.gmra.mrb[20].mxu0 %v2743_v46  ;;  %v879_v46 = vld [vmem:[#allocation5 + $0x240] sm:$0xff] }
 0x452   :  { %2181 = vmatpush3.bf16.msra.mxu0 %v2180_v9  ;;  %v1883_v15 = vpop.f32.mrb[10].mxu0  ;;  %968 = vmatprep.mubr.f32.mxu0 %v758_v11  ;;  %v2189_v0 = vpack.c.bf16 %v880_v22, %v879_v46 }
 0x453   :  { %2182 = vmatprep.subr.bf16.mxu0 %v2425_v43  ;;  %v768_v17 = vpop.f32.mrb[11].mxu0 }
 0x455   :  { %969 = vmatmul.mubr.f32.gmra.mrb[22].mxu0 %v2747_v42 }
 0x456   :  { %2184 = vmatpush3.bf16.msra.mxu0 %v2183_v16  ;;  %v1886_v18 = vpop.f32.mrb[12].mxu0  ;;  %1925 = vmatprep.mubr.msk.f32.mxu0 %vm2426_vm1, %v2427_v26  ;;  %v1197_v16 = vld [vmem:[%s2931_s10 + $0x8] sm:$0xff] }
 0x457   :  { %v778_v19 = vpop.f32.mrb[13].mxu0  ;;  %2185 = vmatprep.subr.bf16.mxu0 %v2425_v43 }
 0x458   :  { %1038 = vmatprep.mubr.f32.mxu1 %v778_v19  ;;  %v1201_v19 = vld [vmem:[%s2931_s10 + $0x28] sm:$0xff] }
 0x459   :  { %1039 = vmatmul.mubr.f32.vlgmr.msra.gmra.mrb[24].mxu1 %v1880_v5 }
 0x45a   :  { %2187 = vmatpush3.bf16.msra.mxu0 %v2186_v21  ;;  %1043 = vmatprep.mubr.f32.mxu1 %v1886_v18  ;;  %v1889_v31 = vpop.f32.mrb[14].mxu0  ;;  %v1200_v21 = vld [vmem:[%s2931_s10 + $0x20] sm:$0xff] }
 0x45b   :  { %2188 = vmatprep.subr.bf16.mxu0 %v2425_v43  ;;  %v788_v42 = vpop.f32.mrb[15].mxu0  ;;  %v2207_v46 = vpack.c.bf16 %v1201_v19, %v1200_v21 }
 0x45d   :  { %1044 = vmatmul.mubr.f32.gmra.mrb[26].mxu1 %v768_v17  ;;  %v1198_v17 = vld [vmem:[%s2931_s10 + $0x10] sm:$0xff] }
 0x45e   :  { %2190 = vmatpush3.bf16.msra.mxu0 %v2189_v0  ;;  %1048 = vmatprep.mubr.f32.mxu1 %v788_v42  ;;  %v1892_v1 = vpop.f32.mrb[16].mxu0  ;;  %v2204_v18 = vpack.c.bf16 %v1199_v45, %v1198_v17 }
 0x45f   :  { %2191 = vmatprep.subr.bf16.mxu0 %v2425_v43  ;;  %v798_v28 = vpop.f32.mrb[17].mxu0 }
 0x461   :  { %1049 = vmatmul.mubr.f32.gmra.mrb[28].mxu1 %v1883_v15  ;;  %v1196_v15 = vld [vmem:[%s2931_s10] sm:$0xff] }
 0x462   :  { %2193 = vmatpush3.bf16.msra.mxu0 %v2192_v25  ;;  %1966 = vmatprep.mubr.msk.f32.mxu1 %vm2426_vm1, %v2427_v26  ;;  %v2201_v20 = vpack.c.bf16 %v1197_v16, %v1196_v15  ;;  %v1530_v16 = vld [vmem:[%s2932_s11] ss:$0 sm:$0xff] }
 0x463   :  { %2194 = vmatprep.subr.bf16.mxu0 %v2425_v43 }
 0x464   :  { %2202 = vmatpush3.bf16.msra.mxu1 %v2201_v20 }
 0x465   :  { %2203 = vmatprep.subr.bf16.mxu1 %v2425_v43 }
 0x466   :  { %2196 = vmatpush3.bf16.msra.mxu0 %v2195_v54 }
 0x467   :  { %2197 = vmatprep.subr.bf16.mxu0 %v2425_v43 }
 0x468   :  { %2205 = vmatpush3.bf16.msra.mxu1 %v2204_v18 }
 0x469   :  { %2206 = vmatprep.subr.bf16.mxu1 %v2425_v43 }
 0x46a   :  { %2199 = vmatpush3.bf16.msra.mxu0 %v2198_v32 }
 0x46b   :  { %2224 = vmatprep.subr.bf16.mxu0 %v2425_v43 }
 0x46c   :  { %2208 = vmatpush3.bf16.msra.mxu1 %v2207_v46 }
 0x46d   :  { %1926 = vmatmul.mubr.f32.vlgmr.msra.gmra.mrb[24].mxu0 %v1889_v31  ;;  %2209 = vmatprep.subr.bf16.mxu1 %v2425_v43 }
 0x46e   :  { %1928 = vmatprep.mubr.msk.f32.mxu0 %vm2426_vm1, %v2427_v26 }
 0x471   :  { %1929 = vmatmul.mubr.f32.gmra.mrb[26].mxu0 %v798_v28 }
 0x472   :  { %1931 = vmatprep.mubr.msk.f32.mxu0 %vm2426_vm1, %v2427_v26 }
 0x475   :  { %1932 = vmatmul.mubr.f32.gmra.mrb[28].mxu0 %v1892_v1 }
 0x476   :  { %2007 = vmatprep.mubr.msk.f32.mxu0 %vm2426_vm1, %v2427_v26 }
 0x520   :  { %v1697_v33 = vpop.f32.mrb[18].mxu0 }
 0x521   :  { %v1698_v34 = vpop.f32.mrb[19].mxu0 }
 0x522   :  { %v1699_v10 = vadd.f32 %v1698_v34, %v1697_v33  ;;  %v1202_v33 = vld [vmem:[%s2931_s10 + $0x30] sm:$0xff]  ;;  %v1203_v34 = vld [vmem:[%s2931_s10 + $0x38] sm:$0xff] }
 0x524   :  { %v1700_v36 = vpop.f32.mrb[20].mxu0  ;;  %v961_v37 = vadd.f32 %v1699_v10, %v1527_v44  ;;  %v2210_v10 = vpack.c.bf16 %v1203_v34, %v1202_v33 }
 0x525   :  { %v1701_v12 = vpop.f32.mrb[21].mxu0 }
 0x526   :  { %v1702_v38 = vadd.f32 %v1701_v12, %v1700_v36  ;;  %2211 = vmatpush3.bf16.msra.mxu1 %v2210_v10  ;;  %v1204_v36 = vld [vmem:[%s2931_s10 + $0x40] sm:$0xff]  ;;  %v1205_v12 = vld [vmem:[%s2931_s10 + $0x48] sm:$0xff] }
 0x527   :  { %2212 = vmatprep.subr.bf16.mxu1 %v2425_v43 }
 0x528   :  { %v1703_v39 = vpop.f32.mrb[22].mxu0  ;;  %v966_v53 = vadd.f32 %v1702_v38, %v1527_v44  ;;  %v2213_v38 = vpack.c.bf16 %v1205_v12, %v1204_v36 }
 0x529   :  { %v1704_v40 = vpop.f32.mrb[23].mxu0 }
 0x52a   :  { %v1705_v41 = vadd.f32 %v1704_v40, %v1703_v39  ;;  %2214 = vmatpush3.bf16.msra.mxu1 %v2213_v38  ;;  %v1206_v39 = vld [vmem:[%s2931_s10 + $0x50] sm:$0xff]  ;;  %v1207_v40 = vld [vmem:[%s2931_s10 + $0x58] sm:$0xff] }
 0x52b   :  { %2215 = vmatprep.subr.bf16.mxu1 %v2425_v43 }
 0x52c   :  { %v1738_v23 = vpop.f32.mrb[24].mxu1  ;;  %v971_v59 = vadd.f32 %v1705_v41, %v1527_v44  ;;  %v2216_v41 = vpack.c.bf16 %v1207_v40, %v1206_v39  ;;  %v1208_v44 = vld [vmem:[%s2931_s10 + $0x60] sm:$0xff] }
 0x52d   :  { %v1739_v47 = vpop.f32.mrb[25].mxu1 }
 0x52e   :  { %v1740_v48 = vadd.f32 %v1739_v47, %v1738_v23  ;;  %2217 = vmatpush3.bf16.msra.mxu1 %v2216_v41  ;;  %v1209_v23 = vld [vmem:[%s2931_s10 + $0x68] sm:$0xff] }
 0x52f   :  { %2218 = vmatprep.subr.bf16.mxu1 %v2425_v43  ;;  %v2219_v47 = vpack.c.bf16 %v1209_v23, %v1208_v44 }
 0x530   :  { %v1741_v49 = vpop.f32.mrb[26].mxu1  ;;  %v1041_v50 = vadd.f32 %v1740_v48, %v961_v37  ;;  %v1210_v37 = vld [vmem:[%s2931_s10 + $0x70] sm:$0xff]  ;;  %v1211_v48 = vld [vmem:[%s2931_s10 + $0x78] sm:$0xff] }
 0x531   :  { %v1742_v51 = vpop.f32.mrb[27].mxu1 }
 0x532   :  { %v1743_v55 = vadd.f32 %v1742_v51, %v1741_v49  ;;  %2220 = vmatpush3.bf16.msra.mxu1 %v2219_v47  ;;  %v2222_v49 = vpack.c.bf16 %v1211_v48, %v1210_v37 }
 0x533   :  { %2221 = vmatprep.subr.bf16.mxu1 %v2425_v43 }
 0x534   :  { %v1744_v56 = vpop.f32.mrb[28].mxu1  ;;  %v1046_v57 = vadd.f32 %v1743_v55, %v966_v53 }
 0x535   :  { %v1745_v58 = vpop.f32.mrb[29].mxu1 }
 0x536   :  { %v1746_v3 = vadd.f32 %v1745_v58, %v1744_v56  ;;  %2223 = vmatpush3.bf16.msra.mxu1 %v2222_v49  ;;  %v1365_v49 = vld [vmem:[#allocation8 + $0x30] sm:$0xff] }
 0x538   :  { %v1051_v60 = vadd.f32 %v1746_v3, %v971_v59 }
 0x540   :  { %v1120_v61 = vpop.f32.mrb[24].mxu0 }
 0x541   :  { %v1121_v62 = vadd.f32 %v1120_v61, %v1041_v50  ;;  %v1927_v63 = vpop.f32.mrb[25].mxu0  ;;  %v1528_v61 = vld [vmem:[%s2929_s8] ss:$0 sm:$0xff] }
 0x542   :  { %v1529_v63 = vld [vmem:[#allocation7] ss:$0 sm:$0xff] }
 0x543   :  { %v1134_v2 = vmax.f32 %v1121_v62, 0.0 }
 0x544   :  { %v1125_v6 = vpop.f32.mrb[26].mxu0 }
 0x545   :  { %v1126_v7 = vadd.f32 %v1125_v6, %v1046_v57  ;;  %1139 = vadd.xlane.f32.xlu0 %v1134_v2  ;;  %v1930_v8 = vpop.f32.mrb[27].mxu0 }
 0x547   :  { %v1135_v9 = vmax.f32 %v1126_v7, 0.0 }
 0x548   :  { %v1130_v5 = vpop.f32.mrb[28].mxu0 }
 0x549   :  { %v1131_v11 = vadd.f32 %v1130_v5, %v1051_v60  ;;  %1141 = vadd.xlane.f32.xlu1 %v1135_v9  ;;  %v1933_v14 = vpop.f32.mrb[29].mxu0 }
 0x54b   :  { %v1136_v13 = vmax.f32 %v1131_v11, 0.0 }
 0x54d   :  { %1143 = vadd.xlane.f32.xlu0 %v1136_v13 }
 0x5d2   :  { %v1140_v22 = vpop.xlane.xlu0 %1139 }
 0x5d3   :  { %v1145_v0 = vmul.f32 0.03125, %v1140_v22 }
 0x5d5   :  { %v1148_v31 = vsub.f32 %v1134_v2, %v1145_v0 }
 0x5d6   :  { %v1142_v42 = vpop.xlane.xlu1 %1141 }
 0x5d7   :  { %v1146_v24 = vmul.f32 0.03125, %v1142_v42  ;;  %v1151_v35 = vsel %vm636_vm2, %v1148_v31, 0.0 }
 0x5d8   :  { %v1154_v25 = vmul.f32 %v1151_v35, %v1151_v35 }
 0x5d9   :  { %v1149_v1 = vsub.f32 %v1135_v9, %v1146_v24 }
 0x5da   :  { %1157 = vadd.xlane.f32.xlu1 %v1154_v25  ;;  %v1144_v27 = vpop.xlane.xlu0 %1143  ;;  %v1360_v25 = vld [vmem:[#allocation8 + $0x8] sm:$0xff] }
 0x5db   :  { %v1147_v52 = vmul.f32 0.03125, %v1144_v27  ;;  %v1152_v28 = vsel %vm636_vm2, %v1149_v1, 0.0  ;;  %v1361_v1 = vld [vmem:[#allocation8 + $0x10] sm:$0xff] }
 0x5dc   :  { %v1155_v54 = vmul.f32 %v1152_v28, %v1152_v28 }
 0x5dd   :  { %v1150_v29 = vsub.f32 %v1136_v13, %v1147_v52  ;;  %v1362_v52 = vld [vmem:[#allocation8 + $0x18] sm:$0xff] }
 0x5de   :  { %1159 = vadd.xlane.f32.xlu0 %v1155_v54  ;;  %v1363_v54 = vld [vmem:[#allocation8 + $0x20] sm:$0xff] }
 0x5df   :  { %v1153_v4 = vsel %vm636_vm2, %v1150_v29, 0.0  ;;  %v1364_v29 = vld [vmem:[#allocation8 + $0x28] sm:$0xff] }
 0x5e0   :  { %v1156_v32 = vmul.f32 %v1153_v4, %v1153_v4 }
 0x5e2   :  { %1161 = vadd.xlane.f32.xlu1 %v1156_v32 }
 0x667   :  { %v1158_v50 = vpop.xlane.xlu1 %1157 }
 0x668   :  { %v1163_v51 = vmul.f32 0.03125, %v1158_v50  ;;  %v1366_v50 = vld [vmem:[#allocation8 + $0x38] sm:$0xff] }
 0x66a   :  { %v1166_v53 = vadd.f32 1e-05, %v1163_v51  ;;  %v2234_v51 = vpack.c.bf16 %v1366_v50, %v1365_v49 }
 0x66b   :  { %v1160_v55 = vpop.xlane.xlu0 %1159 }
 0x66c   :  { %2265 = vrsqrt.f32 %v1166_v53  ;;  %v1164_v56 = vmul.f32 0.03125, %v1160_v55  ;;  %v1368_v53 = vld [vmem:[#allocation8 + $0x48] sm:$0xff] }
 0x66d   :  { %v2237_v55 = vpack.c.bf16 %v1368_v53, %v1367_v30 }
 0x66e   :  { %v1167_v57 = vadd.f32 1e-05, %v1164_v56  ;;  %v1369_v56 = vld [vmem:[#allocation8 + $0x50] sm:$0xff] }
 0x66f   :  { %v1162_v58 = vpop.xlane.xlu1 %1161 }
 0x670   :  { %2267 = vrsqrt.f32 %v1167_v57  ;;  %v1165_v59 = vmul.f32 0.03125, %v1162_v58  ;;  %v1370_v57 = vld [vmem:[#allocation8 + $0x58] sm:$0xff] }
 0x671   :  { %v2240_v58 = vpack.c.bf16 %v1370_v57, %v1369_v56 }
 0x672   :  { %v1168_v3 = vadd.f32 1e-05, %v1165_v59  ;;  %v1371_v59 = vld [vmem:[#allocation8 + $0x60] sm:$0xff] }
 0x674   :  { %2269 = vrsqrt.f32 %v1168_v3  ;;  %v1372_v3 = vld [vmem:[#allocation8 + $0x68] sm:$0xff] }
 0x676   :  { %v2266_v60 = vpop.eup %2265 }
 0x677   :  { %v1172_v62 = vmul.f32 %v2266_v60, %v1151_v35  ;;  %v1359_v35 = vld [vmem:[#allocation8] sm:$0xff]  ;;  %v2243_v60 = vpack.c.bf16 %v1372_v3, %v1371_v59 }
 0x678   :  { %v2225_v27 = vpack.c.bf16 %v1360_v25, %v1359_v35 }
 0x679   :  { %v1181_v2 = vmul.f32 %v1528_v61, %v1172_v62  ;;  %v1374_v62 = vld [vmem:[#allocation8 + $0x78] sm:$0xff] }
 0x67a   :  { %v2268_v6 = vpop.eup %2267  ;;  %2226 = vmatpush3.bf16.msra.mxu0 %v2225_v27 }
 0x67b   :  { %v1190_v7 = vadd.f32 %v1529_v63, %v1181_v2  ;;  %v1173_v8 = vmul.f32 %v2268_v6, %v1152_v28  ;;  %v2228_v28 = vpack.c.bf16 %v1362_v52, %v1361_v1  ;;  %2227 = vmatprep.subr.bf16.mxu0 %v2425_v43 }
 0x67d   :  { %1967 = vmatmul.mubr.f32.vlgmr.msra.gmra.mrb[30].mxu1 %v1190_v7  ;;  %1193 = vst [vmem:[#allocation10] sm:$0xff] %v1190_v7  ;;  %v1182_v9 = vmul.f32 %v1528_v61, %v1173_v8 }
 0x67e   :  { %v2270_v5 = vpop.eup %2269  ;;  %1969 = vmatprep.mubr.msk.f32.mxu1 %vm2426_vm1, %v2427_v26  ;;  %2229 = vmatpush3.bf16.msra.mxu0 %v2228_v28 }
 0x67f   :  { %v1191_v11 = vadd.f32 %v1529_v63, %v1182_v9  ;;  %v1174_v14 = vmul.f32 %v2270_v5, %v1153_v4  ;;  %v2231_v4 = vpack.c.bf16 %v1364_v29, %v1363_v54  ;;  %2230 = vmatprep.subr.bf16.mxu0 %v2425_v43 }
 0x681   :  { %1970 = vmatmul.mubr.f32.gmra.mrb[32].mxu1 %v1191_v11  ;;  %1194 = vst [vmem:[#allocation10 + $0x8] sm:$0xff] %v1191_v11  ;;  %v1183_v13 = vmul.f32 %v1528_v61, %v1174_v14  ;;  %v1373_v61 = vld [vmem:[#allocation8 + $0x70] sm:$0xff] }
 0x682   :  { %1972 = vmatprep.mubr.msk.f32.mxu1 %vm2426_vm1, %v2427_v26  ;;  %2232 = vmatpush3.bf16.msra.mxu0 %v2231_v4 }
 0x683   :  { %v1192_v15 = vadd.f32 %v1529_v63, %v1183_v13  ;;  %2233 = vmatprep.subr.bf16.mxu0 %v2425_v43  ;;  %v2246_v63 = vpack.c.bf16 %v1374_v62, %v1373_v61 }
 0x685   :  { %1973 = vmatmul.mubr.f32.gmra.mrb[34].mxu1 %v1192_v15  ;;  %1195 = vst [vmem:[#allocation10 + $0x10] sm:$0xff] %v1192_v15 }
 0x686   :  { %2235 = vmatpush3.bf16.msra.mxu0 %v2234_v51 }
 0x687   :  { %2236 = vmatprep.subr.bf16.mxu0 %v2425_v43 }
 0x68a   :  { %2238 = vmatpush3.bf16.msra.mxu0 %v2237_v55 }
 0x68b   :  { %2239 = vmatprep.subr.bf16.mxu0 %v2425_v43 }
 0x68e   :  { %2241 = vmatpush3.bf16.msra.mxu0 %v2240_v58 }
 0x68f   :  { %2242 = vmatprep.subr.bf16.mxu0 %v2425_v43 }
 0x692   :  { %2244 = vmatpush3.bf16.msra.mxu0 %v2243_v60 }
 0x693   :  { %2245 = vmatprep.subr.bf16.mxu0 %v2425_v43  ;;  %v1531_v43 = vld [vmem:[%s2933_s12] ss:$0 sm:$0xff]  ;;  %s2428_s12 = smov [#allocation10]  }
 0x696   :  { %2247 = vmatpush3.bf16.msra.mxu0 %v2246_v63 }
 0x750   :  { %v1285_v17 = vpop.f32.mrb[30].mxu1 }
 0x751   :  { %v1286_v20 = vadd.f32 %v1530_v16, %v1285_v17  ;;  %v1968_v45 = vpop.f32.mrb[31].mxu1  ;;  %v1532_v17 = vld [vmem:[%s2934_s13] ss:$0 sm:$0xff]  ;;  %s1470_s13 = sshll.u32 %s2428_s12, 4  ;;  %s1471_s13 = int_to_ptr.vmem [resolvable:$true] %s1470_s13 }
 0x752   :  { %s2365_s22 = scalar_lea.vmem %s1471_s13, 384  ;;  %p2370_p5 = scmp.lt.s32.totalorder %s1471_s13, %s1471_s13 }
 0x753   :  { %v1299_v18 = vmax.f32 %v1286_v20, 0.0  ;;  %p2366_p4 = scmp.ne.s32.totalorder %s1471_s13, %s2365_s22  ;;  %p2371_p6 = scmp.lt.s32.totalorder %s2365_s22, %s2365_s22 }
 0x754   :  { %v1290_v21 = vpop.f32.mrb[32].mxu1 }
 0x755   :  { %v1291_v19 = vadd.f32 %v1530_v16, %v1290_v21  ;;  %1304 = vadd.xlane.f32.xlu0 %v1299_v18  ;;  %v1971_v46 = vpop.f32.mrb[33].mxu1  ;;  %p2372_p7 = por %p2371_p6, %p2370_p5 }
 0x757   :  { %v1300_v22 = vmax.f32 %v1291_v19, 0.0  ;;  %p2373_p8 = pnand %p2372_p7, %p2366_p4 }
 0x758   :  { %v1295_v0 = vpop.f32.mrb[34].mxu1 }
 0x759   :  { %v1296_v31 = vadd.f32 %v1530_v16, %v1295_v0  ;;  %1306 = vadd.xlane.f32.xlu1 %v1300_v22  ;;  %v1974_v42 = vpop.f32.mrb[35].mxu1 }
 0x75b   :  { %v1301_v24 = vmax.f32 %v1296_v31, 0.0 }
 0x75d   :  { %1308 = vadd.xlane.f32.xlu0 %v1301_v24 }
 0x7e2   :  { %v1305_v32 = vpop.xlane.xlu0 %1304 }
 0x7e3   :  { %v1310_v33 = vmul.f32 0.0625, %v1305_v32 }
 0x7e5   :  { %v1314_v34 = vsub.f32 %v1299_v18, %v1310_v33 }
 0x7e6   :  { %v1307_v10 = vpop.xlane.xlu1 %1306 }
 0x7e7   :  { %v1311_v36 = vmul.f32 0.0625, %v1307_v10  ;;  %v1317_v12 = vsel %vm1313_vm3, %v1314_v34, 0.0 }
 0x7e8   :  { %v1320_v38 = vmul.f32 %v1317_v12, %v1317_v12 }
 0x7e9   :  { %v1315_v39 = vsub.f32 %v1300_v22, %v1311_v36 }
 0x7ea   :  { %1323 = vadd.xlane.f32.xlu1 %v1320_v38  ;;  %v1309_v40 = vpop.xlane.xlu0 %1308 }
 0x7eb   :  { %v1312_v41 = vmul.f32 0.0625, %v1309_v40  ;;  %v1318_v44 = vsel %vm1313_vm3, %v1315_v39, 0.0 }
 0x7ec   :  { %v1321_v23 = vmul.f32 %v1318_v44, %v1318_v44 }
 0x7ed   :  { %v1316_v47 = vsub.f32 %v1301_v24, %v1312_v41 }
 0x7ee   :  { %1325 = vadd.xlane.f32.xlu0 %v1321_v23 }
 0x7ef   :  { %v1319_v37 = vsel %vm1313_vm3, %v1316_v47, 0.0 }
 0x7f0   :  { %v1322_v48 = vmul.f32 %v1319_v37, %v1319_v37 }
 0x7f2   :  { %1327 = vadd.xlane.f32.xlu1 %v1322_v48 }
 0x877   :  { %v1324_v2 = vpop.xlane.xlu1 %1323 }
 0x878   :  { %v1329_v6 = vmul.f32 0.0625, %v1324_v2 }
 0x87a   :  { %v1332_v7 = vadd.f32 1e-05, %v1329_v6 }
 0x87b   :  { %v1326_v8 = vpop.xlane.xlu0 %1325 }
 0x87c   :  { %2271 = vrsqrt.f32 %v1332_v7  ;;  %v1330_v9 = vmul.f32 0.0625, %v1326_v8 }
 0x87e   :  { %v1333_v5 = vadd.f32 1e-05, %v1330_v9 }
 0x87f   :  { %v1328_v11 = vpop.xlane.xlu1 %1327 }
 0x880   :  { %2273 = vrsqrt.f32 %v1333_v5  ;;  %v1331_v14 = vmul.f32 0.0625, %v1328_v11 }
 0x882   :  { %v1334_v13 = vadd.f32 1e-05, %v1331_v14 }
 0x884   :  { %2275 = vrsqrt.f32 %v1334_v13 }
 0x886   :  { %v2272_v15 = vpop.eup %2271 }
 0x887   :  { %v1338_v16 = vmul.f32 %v2272_v15, %v1317_v12 }
 0x889   :  { %v1347_v20 = vmul.f32 %v1531_v43, %v1338_v16 }
 0x88a   :  { %v2274_v45 = vpop.eup %2273 }
 0x88b   :  { %v1356_v18 = vadd.f32 %v1532_v17, %v1347_v20  ;;  %v1339_v21 = vmul.f32 %v2274_v45, %v1318_v44 }
 0x88d   :  { %2008 = vmatmul.mubr.f32.vlgmr.msra.gmra.mrb[30].mxu0 %v1356_v18  ;;  %v1348_v19 = vmul.f32 %v1531_v43, %v1339_v21 }
 0x88e   :  { %v2276_v46 = vpop.eup %2275  ;;  %2010 = vmatprep.mubr.msk.f32.mxu0 %vm2426_vm1, %v2427_v26 }
 0x88f   :  { %v1357_v22 = vadd.f32 %v1532_v17, %v1348_v19  ;;  %v1340_v0 = vmul.f32 %v2276_v46, %v1319_v37 }
 0x891   :  { %2011 = vmatmul.mubr.f32.gmra.mrb[32].mxu0 %v1357_v22  ;;  %v1349_v31 = vmul.f32 %v1531_v43, %v1340_v0 }
 0x892   :  { %2013 = vmatprep.mubr.msk.f32.mxu0 %vm2426_vm1, %v2427_v26 }
 0x893   :  { %v1358_v42 = vadd.f32 %v1532_v17, %v1349_v31 }
 0x895   :  { %2014 = vmatmul.mubr.f32.gmra.mrb[34].mxu0 %v1358_v42 }
 0x896   :  { %2376 = shalt.err (!%p2373_p8)
}
 0x897   :  { %s2377_s4 = scalar_lea.hbm %s2939_s18, 384 }
 0x898   :  { %p2378_p9 = scmp.ne.s32.totalorder %s2939_s18, %s2377_s4  ;;  %p2381_p10 = scmp.lt.u32.totalorder %s2377_s4, %s2939_s18 }
 0x89a   :  { %p2383_p11 = pnand %p2381_p10, %p2378_p9 }
 0x89c   :  { %2386 = shalt.err (!%p2383_p11)
}
 0x89d   :  { %1476 = dma.vmem_to_hbm [thread:$0]  %s1471_s13, 384, %s2939_s18, [#allocation4], %s2421_s3, %s2421_s3, %s2422_s26  }
 0x89e   :  { %v1533_v26 = vld [vmem:[%s2936_s15] ss:$0 sm:$0xff]  ;;  %s2429_s27 = smov [#allocation11]  }
 0x89f   :  { %s1482_s29 = sshll.u32 %s2429_s27, 4  ;;  %s1483_s29 = int_to_ptr.vmem [resolvable:$true] %s1482_s29 }
 0x8a0   :  { %s2387_s18 = scalar_lea.vmem %s1483_s29, 384  ;;  %p2392_p13 = scmp.lt.s32.totalorder %s1483_s29, %s1483_s29 }
 0x8a1   :  { %p2388_p12 = scmp.ne.s32.totalorder %s1483_s29, %s2387_s18  ;;  %p2393_p0 = scmp.lt.s32.totalorder %s2387_s18, %s2387_s18 }
 0x8a3   :  { %p2394_p1 = por %p2393_p0, %p2392_p13 }
 0x8a5   :  { %p2395_p2 = pnand %p2394_p1, %p2388_p12 }
 0x960   :  { %v1448_v24 = vpop.f32.mrb[30].mxu0 }
 0x961   :  { %v1449_v35 = vadd.f32 %v1533_v26, %v1448_v24  ;;  %v2009_v25 = vpop.f32.mrb[31].mxu0 }
 0x963   :  { %1462 = vst [vmem:[#allocation11] sm:$0xff] %v1449_v35 }
 0x964   :  { %v1453_v1 = vpop.f32.mrb[32].mxu0 }
 0x965   :  { %v1454_v27 = vadd.f32 %v1533_v26, %v1453_v1  ;;  %v2012_v52 = vpop.f32.mrb[33].mxu0 }
 0x967   :  { %1463 = vst [vmem:[#allocation11 + $0x8] sm:$0xff] %v1454_v27 }
 0x968   :  { %v1458_v28 = vpop.f32.mrb[34].mxu0 }
 0x969   :  { %v1459_v54 = vadd.f32 %v1533_v26, %v1458_v28  ;;  %v2015_v29 = vpop.f32.mrb[35].mxu0 }
 0x96b   :  { %1464 = vst [vmem:[#allocation11 + $0x10] sm:$0xff] %v1459_v54 }
 0x96c   :  { %2398 = shalt.err (!%p2395_p2)
}
 0x96d   :  { %s2399_s16 = scalar_lea.hbm %s2940_s19, 384 }
 0x96e   :  { %p2400_p3 = scmp.ne.s32.totalorder %s2940_s19, %s2399_s16  ;;  %p2403_p4 = scmp.lt.u32.totalorder %s2399_s16, %s2940_s19 }
 0x970   :  { %p2405_p5 = pnand %p2403_p4, %p2400_p3 }
 0x972   :  { %2408 = shalt.err (!%p2405_p5)
}
 0x973   :  { %1488 = dma.vmem_to_hbm [thread:$0]  %s1483_s29, 384, %s2940_s19, [#allocation12], %s2421_s3, %s2421_s3, %s2422_s26  }
 0x974   :  { %2415 = dma.done.wait [#allocation4], 384  }
 0x975   :  { %2416 = vsyncadd [#allocation4], 4294966912 }
 0x976   :  { %2417 = dma.done.wait [#allocation12], 384  }
 0x977   :  { %2418 = vsyncadd [#allocation12], 4294966912 }
 0x978   :  { %1495 = vsyncpa [#allocation3], 1 }
 0x979   :  { %1496 = vsyncpa [#allocation6], 1 }
 0x97a   :  { %1497 = vsyncpa [#allocation9], 1 }
 0x97b   :  { %1498 = vsyncpa [#allocation4], 1 }
 0x97c   :  { %1499 = vsyncpa [#allocation12], 1 }

</bundles_post_ra>
